<compile_context>
chip_gen: v7x
topology: tpu7x:2x2x1
jax: 0.10.0
libtpu: 0.0.40
codegen_flags: <defaults>
</compile_context>

<pallas_src>
import jax
import jax.numpy as jnp
from jax.experimental import pallas as pl
from jax.experimental.pallas import tpu as pltpu


# ---------------------------------------------------------------------------
# Kernel
# ---------------------------------------------------------------------------
def _swiglu_ffn_kernel(x_ref, w13_ref, w2t_ref, o_ref, acc_ref):
    # x_ref:   (tm, dim)      token tile, resident across the hidden axis
    # w13_ref: (dim, 2*th)    hidden-slab of packed [w1^T | w3^T]
    # w2t_ref: (th, dim)      hidden-slab of w2^T
    # o_ref:   (tm, dim)      resident output block (written on last j)
    # acc_ref: (tm, dim) f32  VMEM accumulator scratch
    j = pl.program_id(1)
    th = w2t_ref.shape[0]
    x = x_ref[...]

    # Fused gate/up projection: one MXU matmul producing [h1 | h3], f32 acc.
    h = jnp.dot(x, w13_ref[...], preferred_element_type=jnp.float32)
    h1 = h[:, :th]
    h3 = h[:, th:]

    # SiLU(h1) * h3 : sigmoid on EUP, multiplies on VPU, all f32.
    gated = (h1 * jax.nn.sigmoid(h1)) * h3

    # Partial down-projection for this hidden slab, f32 accumulation.
    partial = jnp.dot(gated.astype(w2t_ref.dtype), w2t_ref[...],
                      preferred_element_type=jnp.float32)

    # First reduction step: write directly (saves a (tm,dim) f32 zero store
    # plus a load+add per token tile). Later steps accumulate.
    @pl.when(j == 0)
    def _first():
        acc_ref[...] = partial

    @pl.when(j > 0)
    def _rest():
        acc_ref[...] += partial

    @pl.when(j == pl.num_programs(1) - 1)
    def _finalize():
        o_ref[...] = acc_ref[...].astype(o_ref.dtype)


# ---------------------------------------------------------------------------
# Host-side helpers
# ---------------------------------------------------------------------------
def _round_up(x, m):
    return ((x + m - 1) // m) * m


def _pick_divisor(total, candidates):
    for c in candidates:
        if c <= total and total % c == 0:
            return c
    return total


def _device_info():
    """(tpu_generation, vmem_capacity_bytes) with safe fallbacks."""
    gen, vmem = 6, 128 * 1024 * 1024
    try:
        kind = jax.devices()[0].device_kind.lower()
        if "v7" in kind:
            gen, vmem = 7, 64 * 1024 * 1024
        elif "v6" in kind:
            gen, vmem = 6, 128 * 1024 * 1024
        elif "v5" in kind:
            gen, vmem = 5, 128 * 1024 * 1024
    except Exception:
        pass
    try:
        vmem = int(pltpu.get_tpu_info().vmem_capacity_bytes)
    except Exception:
        pass
    return gen, vmem


def prepare_ffn_weights(w1, w2, w3, *, th=None, compute_dtype=None):
    """Pre-transpose / pre-pack PyTorch-layout weights ONCE (load time).

    w1, w3: (hidden, dim)   nn.Linear(dim -> hidden).weight
    w2:     (dim, hidden)   nn.Linear(hidden -> dim).weight

    Returns:
      w13: (hidden//th, dim, 2*th)  hidden slab j = [w1^T slab j | w3^T slab j]
      w2t: (hidden, dim)            w2^T (same slabbing along axis 0)
    """
    gen, vmem_cap = _device_info()
    hidden, dim = w1.shape

    # Dtype policy: v5e is HBM-bound in f32 for weight streaming -> bf16.
    if compute_dtype is None:
        if gen == 5 and w1.dtype == jnp.float32:
            compute_dtype = jnp.bfloat16
        else:
            compute_dtype = w1.dtype
    w1 = w1.astype(compute_dtype)
    w2 = w2.astype(compute_dtype)
    w3 = w3.astype(compute_dtype)
    itemsize = jnp.dtype(compute_dtype).itemsize

    if th is None:
        # Fully VMEM-resident weights (single hidden slab) if they fit well
        # under the device budget -> weights are DMA'd once, not per token tile.
        weight_bytes = 3 * dim * hidden * itemsize
        if weight_bytes <= 0.35 * vmem_cap:
            th = hidden
        elif gen >= 7:
            # v7x: 64 MiB VMEM -> cap slab size; keep 256-multiples (2x256 MXU).
            th = _pick_divisor(hidden, (512, 256, 128))
        elif gen == 6:
            # v6e: 128 MiB VMEM; 256-multiples for full MXU tiles (no 384).
            th = _pick_divisor(hidden, (1024, 512, 256, 128))
        else:
            # v5e: 128x128 MXU, 128-multiples are fine.
            th = _pick_divisor(hidden, (1024, 512, 256, 128))
    assert hidden % th == 0, "th must divide hidden"
    nh = hidden // th

    w1t = jnp.transpose(w1)            # (dim, hidden)
    w3t = jnp.transpose(w3)            # (dim, hidden)
    w13 = jnp.concatenate(
        [w1t.reshape(dim, nh, th), w3t.reshape(dim, nh, th)], axis=-1
    )                                  # (dim, nh, 2*th)
    w13 = jnp.transpose(w13, (1, 0, 2))  # (nh, dim, 2*th)
    w2t = jnp.transpose(w2)            # (hidden, dim)
    return w13, w2t


def feed_forward_pallas(x, w13, w2t, *, tm=None, vmem_limit_bytes=None):
    """x: [..., dim]; w13/w2t from prepare_ffn_weights. Returns [..., dim]."""
    orig_shape = x.shape
    dim = orig_shape[-1]
    nh, dim_w, two_th = w13.shape
    th = two_th // 2
    hidden = nh * th
    assert dim_w == dim and w2t.shape == (hidden, dim)

    gen, vmem_cap = _device_info()

    x2d = x.reshape(-1, dim)
    M = x2d.shape[0]
    out_dtype = x.dtype

    # Compute dtype follows the weight dtype (bf16 weights => bf16 MXU inputs,
    # f32 accumulation). Note: f32 x is downcast here if weights are bf16.
    compute_dtype = w13.dtype
    x2d = x2d.astype(compute_dtype)
    isz = lambda dt: jnp.dtype(dt).itemsize
    sub = 16 if compute_dtype == jnp.bfloat16 else 8

    # Token tile: big enough to be MXU-bound when weights are re-streamed per
    # token tile (AI ~ tm FLOPs/byte). Roofline crossover: ~650 on v6e,
    # ~310/TC on v7x, ~240 on v5e.
    if tm is None:
        tm = {5: 256, 6: 512, 7: 512}.get(gen, 512)
    if M <= tm:
        tm = _round_up(M, sub)                 # single token tile
    else:
        align = 256 if gen >= 6 else 128       # full MXU tiles on v6e/v7x
        tm = _round_up(tm, align)

    # Decode regime: tiny M -> weight-bandwidth bound; deepen weight pipelining.
    deep_buf = (M <= 64) and (nh >= 3)
    wbuf = 3 if deep_buf else 2

    # Tight VMEM estimate (double-buffered tiles + intermediates), 25% headroom,
    # capped by the physical device VMEM minus compiler-internal headroom.
    w_bytes = wbuf * (dim * two_th + th * dim) * isz(compute_dtype)

    def _est(tm_):
        return (2 * tm_ * dim * isz(compute_dtype)   # x tiles
                + w_bytes                            # weight slabs
                + 2 * tm_ * dim * isz(out_dtype)     # output tiles
                + tm_ * dim * 4                      # f32 accumulator
                + tm_ * two_th * 4                   # f32 h = [h1|h3]
                + tm_ * th * 4)                      # f32 gated intermediate

    budget_cap = min(100 * 1024 * 1024, vmem_cap - 12 * 1024 * 1024)
    while int(_est(tm) * 1.25) > budget_cap and tm > 2 * sub:
        tm = max(sub, _round_up(tm // 2, sub))
    if vmem_limit_bytes is None:
        vmem_limit_bytes = min(max(int(_est(tm) * 1.25), 8 * 1024 * 1024),
                               budget_cap)

    Mp = _round_up(M, tm)
    if Mp != M:
        x2d = jnp.pad(x2d, ((0, Mp - M), (0, 0)))

    # Serpentine hidden axis: alternate direction per token tile so the last
    # weight slab of token tile i equals the first slab of tile i+1 (re-fetch
    # skipped by the pipeline).
    def _w13_map(i, j):
        jj = jnp.where(i % 2 == 0, j, nh - 1 - j)
        return (jj, 0, 0)

    def _w2t_map(i, j):
        jj = jnp.where(i % 2 == 0, j, nh - 1 - j)
        return (jj, 0)

    w_kwargs = dict(pipeline_mode=pl.Buffered(3)) if deep_buf else {}

    # TODO(synk): on v7x, when profiling shows the layer weight-BW-bound (short
    # sequences), shard the hidden axis across the 2 TensorCores (partial sums
    # combined via VMEM_SHARED/CMEM) instead of the token axis.
    out2d = pl.pallas_call(
        _swiglu_ffn_kernel,
        out_shape=jax.ShapeDtypeStruct((Mp, dim), out_dtype),
        grid_spec=pltpu.PrefetchScalarGridSpec(
            num_scalar_prefetch=0,
            grid=(Mp // tm, nh),                   # (tokens, hidden-reduction)
            in_specs=[
                pl.BlockSpec((tm, dim), lambda i, j: (i, 0)),
                pl.BlockSpec((None, dim, 2 * th), _w13_map, **w_kwargs),
                pl.BlockSpec((th, dim), _w2t_map, **w_kwargs),
            ],
            out_specs=pl.BlockSpec((tm, dim), lambda i, j: (i, 0)),
            scratch_shapes=[pltpu.VMEM((tm, dim), jnp.float32)],
        ),
        compiler_params=pltpu.CompilerParams(
            dimension_semantics=("parallel", "arbitrary"),
            vmem_limit_bytes=int(vmem_limit_bytes),
        ),
    )(x2d, w13, w2t)

    if Mp != M:
        out2d = out2d[:M]
    return out2d.reshape(orig_shape)


# ---------------------------------------------------------------------------
# Module-equivalent setup helpers
# ---------------------------------------------------------------------------
def _compute_hidden_dim(dim, hidden_dim, multiple_of, ffn_dim_multiplier):
    hidden_dim = int(2 * hidden_dim / 3)
    if ffn_dim_multiplier is not None:
        hidden_dim = int(ffn_dim_multiplier * hidden_dim)
    hidden_dim = multiple_of * ((hidden_dim + multiple_of - 1) // multiple_of)
    return hidden_dim


def _init_linear_weight(key, out_features, in_features, dtype=jnp.float32):
    # Deterministic init mirroring nn.Linear default: U(-1/sqrt(in), 1/sqrt(in))
    bound = 1.0 / (in_features ** 0.5)
    return jax.random.uniform(key, (out_features, in_features),
                              dtype=dtype, minval=-bound, maxval=bound)


if __name__ == "__main__":
    # Small, TPU-friendly shapes consistent with the module.
    batch, seq, dim = 2, 128, 128
    multiple_of = 128
    hidden = _compute_hidden_dim(dim, 4 * dim, multiple_of, None)   # -> 384

    key = jax.random.PRNGKey(0)
    kx, k1, k2, k3 = jax.random.split(key, 4)
    x = jax.random.normal(kx, (batch, seq, dim), dtype=jnp.float32)
    w1 = _init_linear_weight(k1, hidden, dim)   # [hidden, dim]
    w3 = _init_linear_weight(k3, hidden, dim)   # [hidden, dim]
    w2 = _init_linear_weight(k2, dim, hidden)   # [dim, hidden]

    h1 = x @ w1.T
    ref = (h1 * jax.nn.sigmoid(h1) * (x @ w3.T)) @ w2.T

    # ---- f32 streamed-weight path: 2 token tiles x 3 hidden tiles (serpentine)
    w13, w2t = prepare_ffn_weights(w1, w2, w3, th=128,
                                   compute_dtype=jnp.float32)  # packed ONCE
    out = jax.block_until_ready(feed_forward_pallas(x, w13, w2t, tm=128))
    assert out.shape == (batch, seq, dim)
    assert jnp.allclose(out, ref, atol=2e-3, rtol=2e-3), \
        float(jnp.max(jnp.abs(out - ref)))

    # ---- bf16 path, fully automatic tiling (weights VMEM-resident, nh=1) ----
    xb = x.astype(jnp.bfloat16)
    w13b, w2tb = prepare_ffn_weights(w1.astype(jnp.bfloat16),
                                     w2.astype(jnp.bfloat16),
                                     w3.astype(jnp.bfloat16))
    outb = jax.block_until_ready(feed_forward_pallas(xb, w13b, w2tb))
    h1b = jnp.dot(xb, w1.astype(jnp.bfloat16).T,
                  preferred_element_type=jnp.float32)
    h3b = jnp.dot(xb, w3.astype(jnp.bfloat16).T,
                  preferred_element_type=jnp.float32)
    gb = (h1b * jax.nn.sigmoid(h1b)) * h3b
    refb = jnp.dot(gb.astype(jnp.bfloat16), w2.astype(jnp.bfloat16).T,
                   preferred_element_type=jnp.float32)
    assert outb.shape == (batch, seq, dim)
    assert jnp.allclose(outb.astype(jnp.float32), refb, atol=5e-2, rtol=5e-2)

    # ---- decode path (tiny M): exercises pl.Buffered(3) weight pipelining ----
    xd = x[:1, :4]                                   # (1, 4, 128) -> M = 4
    outd = jax.block_until_ready(feed_forward_pallas(xd, w13, w2t))
    h1d = xd @ w1.T
    refd = (h1d * jax.nn.sigmoid(h1d) * (xd @ w3.T)) @ w2.T
    assert jnp.allclose(outd, refd, atol=2e-3, rtol=2e-3), \
        float(jnp.max(jnp.abs(outd - refd)))

    print("KERNEL_OK")
</pallas_src>

<mosaic_0001>
module attributes {stable_mosaic.version = 11 : i64} {
  func.func @_swiglu_ffn_kernel(%arg0: i32, %arg1: i32, %arg2: memref<256x128xf32, #tpu.memory_space<vmem>>, %arg3: memref<1x128x256xf32, #tpu.memory_space<vmem>>, %arg4: memref<128x128xf32, #tpu.memory_space<vmem>>, %arg5: memref<256x128xf32, #tpu.memory_space<vmem>>, %arg6: memref<256x128xf32, #tpu.memory_space<vmem>>) attributes {dimension_semantics = [#tpu.dimension_semantics<parallel>, #tpu.dimension_semantics<arbitrary>], iteration_bounds = array<i64: 1, 3>, scalar_prefetch = 0 : i64, scratch_operands = 1 : i64, tpu.core_type = #tpu.core_type<tc>, window_params = [{transform_indices = @transform_0, window_bounds = array<i64: 256, 128>}, {transform_indices = @transform_1, window_bounds = array<i64: 1, 128, 256>}, {transform_indices = @transform_2, window_bounds = array<i64: 128, 128>}, {transform_indices = @transform_3, window_bounds = array<i64: 256, 128>}]} {
    %c0 = arith.constant 0 : index
    %c0_0 = arith.constant 0 : index
    %0 = vector.load %arg2[%c0, %c0_0] : memref<256x128xf32, #tpu.memory_space<vmem>>, vector<256x128xf32>
    %c0_1 = arith.constant 0 : index
    %c0_2 = arith.constant 0 : index
    %c0_3 = arith.constant 0 : index
    %1 = vector.load %arg3[%c0_1, %c0_2, %c0_3] : memref<1x128x256xf32, #tpu.memory_space<vmem>>, vector<1x128x256xf32>
    %2 = vector.shape_cast %1 : vector<1x128x256xf32> to vector<128x256xf32>
    %cst = arith.constant dense<0.000000e+00> : vector<256x256xf32>
    %3 = tpu.matmul %0, %2, %cst {dimension_numbers = #tpu.dot_dimension_numbers<[1], [0], [0], [1], [0, 0, 1, 1], [], []>} : vector<256x128xf32>, vector<128x256xf32>, vector<256x256xf32> -> vector<256x256xf32>
    %4 = vector.extract_strided_slice %3 {offsets = [0, 0], sizes = [256, 128], strides = [1, 1]} : vector<256x256xf32> to vector<256x128xf32>
    %5 = vector.extract_strided_slice %3 {offsets = [0, 128], sizes = [256, 128], strides = [1, 1]} : vector<256x256xf32> to vector<256x128xf32>
    %6 = arith.negf %4 : vector<256x128xf32>
    %7 = math.exp %6 : vector<256x128xf32>
    %cst_4 = arith.constant 1.000000e+00 : f32
    %8 = vector.broadcast %cst_4 : f32 to vector<256x128xf32>
    %9 = arith.addf %8, %7 : vector<256x128xf32>
    %10 = arith.divf %8, %9 : vector<256x128xf32>
    %11 = arith.mulf %4, %10 : vector<256x128xf32>
    %12 = arith.mulf %11, %5 : vector<256x128xf32>
    %c0_5 = arith.constant 0 : index
    %c0_6 = arith.constant 0 : index
    %13 = vector.load %arg4[%c0_5, %c0_6] : memref<128x128xf32, #tpu.memory_space<vmem>>, vector<128x128xf32>
    %cst_7 = arith.constant dense<0.000000e+00> : vector<256x128xf32>
    %14 = tpu.matmul %12, %13, %cst_7 {dimension_numbers = #tpu.dot_dimension_numbers<[1], [0], [0], [1], [0, 0, 1, 1], [], []>} : vector<256x128xf32>, vector<128x128xf32>, vector<256x128xf32> -> vector<256x128xf32>
    %c0_i32 = arith.constant 0 : i32
    %15 = arith.cmpi eq, %arg1, %c0_i32 : i32
    %16 = arith.extui %15 : i1 to i32
    %c0_i32_8 = arith.constant 0 : i32
    %17 = arith.cmpi ne, %16, %c0_i32_8 : i32
    scf.if %17 {
      %c0_12 = arith.constant 0 : index
      %c0_13 = arith.constant 0 : index
      %24 = vector.load %arg6[%c0_12, %c0_13] : memref<256x128xf32, #tpu.memory_space<vmem>>, vector<256x128xf32>
      tpu.vector_store %arg6[%c0_12, %c0_13], %14 {strides = array<i32>} : memref<256x128xf32, #tpu.memory_space<vmem>>, vector<256x128xf32>,
    } else {
    }
    %c0_i32_9 = arith.constant 0 : i32
    %18 = arith.cmpi sgt, %arg1, %c0_i32_9 : i32
    %19 = arith.extui %18 : i1 to i32
    %c0_i32_10 = arith.constant 0 : i32
    %20 = arith.cmpi ne, %19, %c0_i32_10 : i32
    scf.if %20 {
      %c0_12 = arith.constant 0 : index
      %c0_13 = arith.constant 0 : index
      %24 = vector.load %arg6[%c0_12, %c0_13] : memref<256x128xf32, #tpu.memory_space<vmem>>, vector<256x128xf32>
      %25 = arith.addf %24, %14 : vector<256x128xf32>
      %c0_14 = arith.constant 0 : index
      %c0_15 = arith.constant 0 : index
      %26 = vector.load %arg6[%c0_14, %c0_15] : memref<256x128xf32, #tpu.memory_space<vmem>>, vector<256x128xf32>
      tpu.vector_store %arg6[%c0_14, %c0_15], %25 {strides = array<i32>} : memref<256x128xf32, #tpu.memory_space<vmem>>, vector<256x128xf32>,
    } else {
    }
    %c2_i32 = arith.constant 2 : i32
    %21 = arith.cmpi eq, %arg1, %c2_i32 : i32
    %22 = arith.extui %21 : i1 to i32
    %c0_i32_11 = arith.constant 0 : i32
    %23 = arith.cmpi ne, %22, %c0_i32_11 : i32
    scf.if %23 {
      %c0_12 = arith.constant 0 : index
      %c0_13 = arith.constant 0 : index
      %24 = vector.load %arg6[%c0_12, %c0_13] : memref<256x128xf32, #tpu.memory_space<vmem>>, vector<256x128xf32>
      %c0_14 = arith.constant 0 : index
      %c0_15 = arith.constant 0 : index
      %25 = vector.load %arg5[%c0_14, %c0_15] : memref<256x128xf32, #tpu.memory_space<vmem>>, vector<256x128xf32>
      tpu.vector_store %arg5[%c0_14, %c0_15], %24 {strides = array<i32>} : memref<256x128xf32, #tpu.memory_space<vmem>>, vector<256x128xf32>,
    } else {
    }
    return
  }
  func.func @transform_0(%arg0: i32, %arg1: i32) -> (i32, i32) {
    %c0_i32 = arith.constant 0 : i32
    %c0_i32_0 = arith.constant 0 : i32
    return %arg0, %c0_i32 : i32, i32
  }
  func.func @transform_1(%arg0: i32, %arg1: i32) -> (i32, i32, i32) {
    %c2_i32 = arith.constant 2 : i32
    %c0_i32 = arith.constant 0 : i32
    %0 = arith.cmpi eq, %c2_i32, %c0_i32 : i32
    %c1_i32 = arith.constant 1 : i32
    %1 = arith.select %0, %c1_i32, %c2_i32 : i32
    %2 = arith.remsi %arg0, %1 : i32
    %c0_i32_0 = arith.constant 0 : i32
    %3 = arith.cmpi ne, %2, %c0_i32_0 : i32
    %c0_i32_1 = arith.constant 0 : i32
    %4 = arith.cmpi slt, %2, %c0_i32_1 : i32
    %c0_i32_2 = arith.constant 0 : i32
    %5 = arith.cmpi slt, %1, %c0_i32_2 : i32
    %6 = arith.xori %4, %5 : i1
    %7 = arith.andi %6, %3 : i1
    %8 = arith.addi %2, %1 : i32
    %9 = arith.select %7, %8, %2 : i32
    %c0_i32_3 = arith.constant 0 : i32
    %10 = arith.cmpi eq, %9, %c0_i32_3 : i32
    %c2_i32_4 = arith.constant 2 : i32
    %11 = arith.subi %c2_i32_4, %arg1 : i32
    %12 = arith.select %10, %arg1, %11 : i32
    %c0_i32_5 = arith.constant 0 : i32
    %c0_i32_6 = arith.constant 0 : i32
    %c0_i32_7 = arith.constant 0 : i32
    return %12, %c0_i32_5, %c0_i32_6 : i32, i32, i32
  }
  func.func @transform_2(%arg0: i32, %arg1: i32) -> (i32, i32) {
    %c2_i32 = arith.constant 2 : i32
    %c0_i32 = arith.constant 0 : i32
    %0 = arith.cmpi eq, %c2_i32, %c0_i32 : i32
    %c1_i32 = arith.constant 1 : i32
    %1 = arith.select %0, %c1_i32, %c2_i32 : i32
    %2 = arith.remsi %arg0, %1 : i32
    %c0_i32_0 = arith.constant 0 : i32
    %3 = arith.cmpi ne, %2, %c0_i32_0 : i32
    %c0_i32_1 = arith.constant 0 : i32
    %4 = arith.cmpi slt, %2, %c0_i32_1 : i32
    %c0_i32_2 = arith.constant 0 : i32
    %5 = arith.cmpi slt, %1, %c0_i32_2 : i32
    %6 = arith.xori %4, %5 : i1
    %7 = arith.andi %6, %3 : i1
    %8 = arith.addi %2, %1 : i32
    %9 = arith.select %7, %8, %2 : i32
    %c0_i32_3 = arith.constant 0 : i32
    %10 = arith.cmpi eq, %9, %c0_i32_3 : i32
    %c2_i32_4 = arith.constant 2 : i32
    %11 = arith.subi %c2_i32_4, %arg1 : i32
    %12 = arith.select %10, %arg1, %11 : i32
    %c0_i32_5 = arith.constant 0 : i32
    %c0_i32_6 = arith.constant 0 : i32
    return %12, %c0_i32_5 : i32, i32
  }
  func.func @transform_3(%arg0: i32, %arg1: i32) -> (i32, i32) {
    %c0_i32 = arith.constant 0 : i32
    %c0_i32_0 = arith.constant 0 : i32
    return %arg0, %c0_i32 : i32, i32
  }
}

</mosaic_0001>

<bundles_post_ra>
// kernel: tpu_custom_call.1
= control target key start
LH: loop header
LB: loop body
LE: loop exit
PB: predicated region body
PF: predicated region fallthrough
CT: control target
= control target key end

     0   :  { %8 = vsyncpa [#allocation4], 0  ;;  %s2848_s0 = inlined_call_operand.hbm [shape: f32[256,128], index: 0, kind: input, shape index: {}]   ;;  %s2849_s1 = inlined_call_operand.hbm [shape: f32[3,128,256], index: 1, kind: input, shape index: {}]   ;;  %s2850_s2 = inlined_call_operand.hbm [shape: f32[384,128], index: 2, kind: input, shape index: {}]   ;;  %s2851_s3 = inlined_call_operand.hbm [shape: f32[256,128], index: 3, kind: output, shape index: {}]  }
   0x1   :  { %9 = vsyncpa [#allocation7], 0 }
   0x2   :  { %11 = vsyncpa [#allocation7 + $0x1], 0 }
   0x3   :  { %12 = vsyncpa [#allocation5], 0  ;;  %s2187_s12 = smov 0   ;;  %s2189_s13 = smov 0  }
   0x4   :  { %s2191_s14 = smov 0   ;;  %s2193_s15 = smov 0  }
   0x5   :  { %s2195_s16 = smov 0   ;;  %s2197_s17 = smov 0  }
   0x6 LB: > { %s27_s18 = sadd.s32 1, %s2150_s16  ;;  %s93_s19 = sadd.s32 1, %s2142_s14  ;;  %s2154_s17 = sphi %s2197_s17, %s18_s17   ;;  %s2150_s16 = sphi %s2195_s16, %s2867_s16   ;;  %s2146_s15 = sphi %s2193_s15, %s2866_s15   ;;  %s2142_s14 = sphi %s2191_s14, %s2865_s14   ;;  %s2138_s13 = sphi %s2189_s13, %s2864_s13   ;;  %s2134_s12 = sphi %s2187_s12, %s2863_s12  }
   0x7   : > { %p28_p0 = scmp.ge.s32.totalorder %s27_s18, 3  ;;  %p100_p1 = scmp.ne.s32.totalorder %s2142_s14, %s2138_s13 }
   0x8   : > { %p101_p2 = scmp.eq.s32.totalorder %s2154_s17, 0  ;;  %p1793_p4 = scmp.lt.s32.totalorder %s2154_s17, 3 }
   0x9   : > { %s2869_s18 = smov (%p28_p0, %s27_s18), 0  ;;  %s228_s21 = sand.u32 1, %s2154_s17  }
   0xa   : > { %p102_p3 = por %p101_p2, %p100_p1  ;;  %s90_s20 = ssub.s32 %s2150_s16, %s2869_s18 }
   0xb   : > { %p91_p5 = scmp.eq.s32.totalorder %s90_s20, 0  ;;  %s230_s22 = sand.u32 1, %s2142_s14  }
   0xc   : > { %s1559_s23 = sshll.u32 %s2150_s16, 12  ;;  %s1510_s25 = sshll.u32 %s230_s22, 8 }
   0xd   : > { %s2231_s24 = scalar_select %p91_p5, %s2142_s14, %s93_s19  }
   0xe   : > { %s2236_s28 = scalar_lea.hbm %s2849_s1, %s1559_s23  ;;  %p2238_p6 = pnand %p1793_p4, %p102_p3 }
   0xf   : > { %s232_s30 = scalar_lea.vmem [#allocation6], %s1510_s25  ;;  %s2244_s5 = sshll.u32 %s230_s22, 7 }
  0x10   : > { %s254_s4 = sshll.u32 %s232_s30, 4  ;;  %s2246_s6 = scalar_lea.sflag [#allocation7], %s228_s21  ;;  %s2242_s4 = int_to_ptr.vmem [resolvable:$true] %s254_s4 }
  0x11   : > { %s1982_s7 = scalar_lea.hbm %s2236_s28, 4096  ;;  %p1984_p8 = pneg %p2238_p6 }
  0x12   : > { %p1983_p7 = scmp.ne.s32.totalorder %s2236_s28, %s1982_s7  ;;  %s1987_s10 = scalar_lea.hbm %s2849_s1, 12288 }
  0x13   : > { %p1988_p11 = scmp.lt.u32.totalorder %s2236_s28, %s2849_s1  ;;  %p1989_p12 = scmp.lt.u32.totalorder %s1987_s10, %s1982_s7 }
  0x14   : > { %p1985_p9 = pnand %p1984_p8, %p1983_p7  ;;  %p1991_p0 = scmp.lt.u32.totalorder %s1982_s7, %s2236_s28 }
  0x15   : > { %p1990_p13 = por %p1989_p12, %p1988_p11 }
  0x16   : > { %p1986_p10 = pneg %p1985_p9 }
  0x17   : > { %p1992_p1 = por %p1991_p0, %p1990_p13 }
  0x19   : > { %p1993_p2 = pnand %p1992_p1, %p1986_p10 }
  0x1b   : > { %1996 = shalt.err (!%p1993_p2)
}
  0x1c   : > { %s1997_s20 = scalar_lea.vmem %s2242_s4, 4096  ;;  %s2156_s21 = smov [#allocation6]  }
  0x1d   : > { %p1998_p3 = scmp.ne.s32.totalorder %s2242_s4, %s1997_s20  ;;  %s2002_s22 = sshll.u32 %s2156_s21, 4  ;;  %s2003_s22 = int_to_ptr.vmem [resolvable:$false] %s2002_s22 }
  0x1e   : > { %s2004_s23 = scalar_lea.vmem %s2003_s22, 8192  ;;  %p2005_p7 = scmp.lt.s32.totalorder %s2242_s4, %s2003_s22 }
  0x1f   : > { %p2000_p4 = pnand %p1998_p3, %p1984_p8  ;;  %p2006_p9 = scmp.lt.s32.totalorder %s2004_s23, %s1997_s20 }
  0x21   : > { %p2001_p5 = pneg %p2000_p4  ;;  %p2007_p11 = por %p2006_p9, %p2005_p7 }
  0x23   : > { %p2008_p12 = pnand %p2007_p11, %p2001_p5 }
  0x25   : > { %2011 = shalt.err (!%p2008_p12)
}
  0x26   : > { %s2157_s25 = smov 256   ;;  %s2158_s26 = smov 16  }
  0x27   : > { %1788 = dma.hbm_to_vmem [thread:$0]  (!%p2238_p6), %s2236_s28, 4096, %s2242_s4, %s2246_s6, %s2157_s25, %s2157_s25, %s2158_s26  }
  0x28   : > { %s268_s27 = scalar_lea.vmem [#allocation8], %s2244_s5  ;;  %s2276_s7 = sadd.s32 4294967295, %s2154_s17  }
  0x29   : > { %s290_s30 = sshll.u32 %s268_s27, 4  ;;  %p106_p10 = scmp.ne.s32.totalorder %s2138_s13, %s2134_s12  ;;  %s2298_s30 = int_to_ptr.vmem [resolvable:$true] %s290_s30 }
  0x2a   : > { %p2852_p13 = scmp.eq.s32.totalorder %s2276_s7, 0  ;;  %p1507_p0 = scmp.ge.s32.totalorder %s2154_s17, 1 }
  0x2b   : > { %p199_p1 = scmp.lt.s32.totalorder %s2154_s17, 4  ;;  %s2159_s28 = smov [#allocation3]  }
  0x2c   : > { %p2285_p2 = por %p2852_p13, %p106_p10  ;;  %s214_s4 = sshll.u32 %s2159_s28, 4  ;;  %s2293_s4 = int_to_ptr.vmem [resolvable:$true] %s214_s4 }
  0x2d   : > { %p2289_p3 = pnand %p1507_p0, %p199_p1  ;;  %s1560_s12 = sshll.u32 %s2150_s16, 11 }
  0x2e   : > { %s2856_s8 = scalar_select %p2285_p2, 1, 0 }
  0x2f   : > { %s2857_s9 = scalar_select %p2289_p3, 1, 0 }
  0x30   : > { %p1781_p4 = pneg %p2289_p3  ;;  %s2309_s19 = scalar_lea.hbm %s2850_s2, %s1560_s12 }
  0x31   : > { %s2012_s20 = scalar_lea.hbm %s2309_s19, 2048  ;;  %s2017_s23 = scalar_lea.hbm %s2850_s2, 6144 }
  0x32   : > { %p2302_p5 = pnand %p1781_p4, %p2852_p13  ;;  %p2013_p7 = scmp.ne.s32.totalorder %s2309_s19, %s2012_s20 }
  0x33   : > { %p2018_p12 = scmp.lt.u32.totalorder %s2309_s19, %s2850_s2  ;;  %p2019_p10 = scmp.lt.u32.totalorder %s2017_s23, %s2012_s20 }
  0x34   : > { %p2015_p9 = pnand %p2013_p7, %p1984_p8  ;;  %p2021_p1 = scmp.lt.u32.totalorder %s2012_s20, %s2309_s19 }
  0x35   : > { %p2020_p0 = por %p2019_p10, %p2018_p12 }
  0x36   : > { %p2016_p11 = pneg %p2015_p9 }
  0x37   : > { %p2022_p4 = por %p2021_p1, %p2020_p0 }
  0x39   : > { %p2023_p13 = pnand %p2022_p4, %p2016_p11 }
  0x3b   : > { %2026 = shalt.err (!%p2023_p13)
}
  0x3c   : > { %s2027_s27 = scalar_lea.vmem %s2298_s30, 2048  ;;  %s2160_s28 = smov [#allocation8]  }
  0x3d   : > { %p2028_p7 = scmp.ne.s32.totalorder %s2298_s30, %s2027_s27  ;;  %s2032_s12 = sshll.u32 %s2160_s28, 4  ;;  %s2033_s12 = int_to_ptr.vmem [resolvable:$false] %s2032_s12 }
  0x3e   : > { %s2034_s10 = scalar_lea.vmem %s2033_s12, 4096  ;;  %p2035_p3 = scmp.lt.s32.totalorder %s2298_s30, %s2033_s12 }
  0x3f   : > { %p2030_p9 = pnand %p2028_p7, %p1984_p8  ;;  %p2036_p12 = scmp.lt.s32.totalorder %s2034_s10, %s2027_s27 }
  0x41   : > { %p2031_p2 = pneg %p2030_p9  ;;  %p2037_p10 = por %p2036_p12, %p2035_p3 }
  0x43   : > { %p2038_p0 = pnand %p2037_p10, %p2031_p2 }
  0x45   : > { %2041 = shalt.err (!%p2038_p0)
}
  0x46   : > { %s2161_s11 = smov 128   ;;  %s2162_s20 = smov 8  }
  0x47   : > { %1791 = dma.hbm_to_vmem [thread:$0]  (!%p2238_p6), %s2309_s19, 2048, %s2298_s30, %s2246_s6, %s2161_s11, %s2161_s11, %s2162_s20  }
  0x48   : > { %s2042_s23 = scalar_lea.hbm %s2848_s0, 4096  ;;  %p2044_p13 = pneg %p2302_p5 }
  0x49   : > { %p2043_p8 = scmp.ne.s32.totalorder %s2848_s0, %s2042_s23  ;;  %p2049_p11 = scmp.lt.u32.totalorder %s2042_s23, %s2848_s0 }
  0x4b   : > { %p2045_p2 = pnand %p2044_p13, %p2043_p8 }
  0x4d   : > { %p2046_p3 = pneg %p2045_p2 }
  0x4f   : > { %p2051_p1 = pnand %p2049_p11, %p2046_p3 }
  0x51   : > { %2054 = shalt.err (!%p2051_p1)
}
  0x52   : > { %s2055_s29 = scalar_lea.vmem %s2293_s4, 4096  ;;  %p2063_p9 = scmp.lt.s32.totalorder %s2293_s4, %s2293_s4 }
  0x53   : > { %p2056_p6 = scmp.ne.s32.totalorder %s2293_s4, %s2055_s29  ;;  %p2064_p12 = scmp.lt.s32.totalorder %s2055_s29, %s2055_s29 }
  0x55   : > { %p2058_p4 = pnand %p2056_p6, %p2044_p13  ;;  %p2065_p10 = por %p2064_p12, %p2063_p9 }
  0x57   : > { %p2059_p7 = pneg %p2058_p4 }
  0x59   : > { %p2066_p0 = pnand %p2065_p10, %p2059_p7 }
  0x5b   : > { %2069 = shalt.err (!%p2066_p0)
}
  0x5c   : > { %1784 = dma.hbm_to_vmem [thread:$0]  (!%p2302_p5), %s2848_s0, 4096, %s2293_s4, [#allocation4], %s2161_s11, %s2161_s11, %s2162_s20  }
  0x5d   : > { %p2859_p8 = scmp.ne.s32.totalorder %s2857_s9, 0 }
  0x5e   : > { %p2860_p2 = scmp.eq.s32.totalorder (!%p2859_p8), %s2276_s7, 0 }
  0x5f   : > { %302 = sbr.rel (%p2859_p8) target bundleno = 771 (0x303), region = 32 }
  0x66   : > { %2121 = dma.done.wait (%p2860_p2), [#allocation4], 4096   ;;  %p2861_p13 = pmov %p2860_p2 }
  0x67   : > { %s308_s19 = sand.u32 1, %s2276_s7   ;;  %s310_s5 = sand.u32 1, %s2138_s13  }
  0x68   : > { %2123 = vsyncadd (%p2861_p13), [#allocation4], 4294963200  ;;  %s1518_s12 = sshll.u32 %s310_s5, 8  ;;  %s309_s10 = scalar_lea.sflag [#allocation7], %s308_s19 }
  0x69   : > { %s2366_s21 = scalar_lea.vmem [#allocation6], %s1518_s12  ;;  %p2862_p5 = scmp.ne.s32.totalorder %s2856_s8, 0 }
  0x6b   : > { %2125 = dma.done.wait (%p2862_p5), %s309_s10, 6144  }
  0x6c   : > { %2127 = vsyncadd (%p2862_p5), %s309_s10, 4294961152  ;;  %v2163_v0 = vmov 0.0   ;;  %v410_v1 = vld [vmem:[%s2366_s21 + $0x8] sm:$0xff]  ;;  %v412_v2 = vld [vmem:[%s2366_s21 + $0x18] sm:$0xff]  ;;  %s1519_s8 = sshll.u32 %s310_s5, 7  ;;  %p1552_p3 = scmp.ne.s32.totalorder %s2146_s15, 0 }
  0x6d   : > { %505 = vmatprep.mubr.f32.mxu0 %v2163_v0  ;;  %649 = vmatprep.mubr.f32.mxu1 %v2163_v0  ;;  %v409_v3 = vld [vmem:[%s2366_s21] sm:$0xff]  ;;  %v1689_v4 = vpack.c.bf16 %v412_v2, %v410_v1  ;;  %v411_v5 = vld [vmem:[%s2366_s21 + $0x10] sm:$0xff]  ;;  %v414_v6 = vld [vmem:[%s2366_s21 + $0x28] sm:$0xff]  ;;  %s2436_s9 = scalar_lea.vmem [#allocation8], %s1519_s8 }
  0x6e   : > { %v416_v7 = vld [vmem:[%s2366_s21 + $0x38] sm:$0xff]  ;;  %v1691_v8 = vpack.c.bf16 %v411_v5, %v409_v3  ;;  %v413_v10 = vld [vmem:[%s2366_s21 + $0x20] sm:$0xff]  ;;  %v415_v11 = vld [vmem:[%s2366_s21 + $0x30] sm:$0xff] }
  0x6f   : > { %v1693_v9 = vpack.c.bf16 %v416_v7, %v414_v6  ;;  %v418_v12 = vld [vmem:[%s2366_s21 + $0x48] sm:$0xff]  ;;  %1690 = vmatprep.subr.bf16.mxu0 %v1689_v4  ;;  %v420_v13 = vld [vmem:[%s2366_s21 + $0x58] sm:$0xff]  ;;  %1753 = vmatprep.subr.bf16.mxu1 %v1689_v4  ;;  %v1695_v14 = vpack.c.bf16 %v415_v11, %v413_v10  ;;  %v417_v16 = vld [vmem:[%s2366_s21 + $0x40] sm:$0xff] }
  0x70   : > { %1692 = vmatpush1.bf16.msra.mxu0 %v1691_v8  ;;  %1761 = vmatpush1.bf16.msra.mxu1 %v1691_v8  ;;  %v1697_v15 = vpack.c.bf16 %v420_v13, %v418_v12  ;;  %v419_v17 = vld [vmem:[%s2366_s21 + $0x50] sm:$0xff]  ;;  %v422_v18 = vld [vmem:[%s2366_s21 + $0x68] sm:$0xff]  ;;  %v424_v19 = vld [vmem:[%s2366_s21 + $0x78] sm:$0xff] }
  0x71   : > { %1694 = vmatprep.subr.bf16.mxu0 %v1693_v9  ;;  %1754 = vmatprep.subr.bf16.mxu1 %v1693_v9  ;;  %v1699_v20 = vpack.c.bf16 %v419_v17, %v417_v16  ;;  %v1701_v21 = vpack.c.bf16 %v424_v19, %v422_v18  ;;  %v421_v22 = vld [vmem:[%s2366_s21 + $0x60] sm:$0xff]  ;;  %v423_v23 = vld [vmem:[%s2366_s21 + $0x70] sm:$0xff]  ;;  %v426_v24 = vld [vmem:[%s2366_s21 + $0x88] sm:$0xff] }
  0x72   : > { %v428_v25 = vld [vmem:[%s2366_s21 + $0x98] sm:$0xff]  ;;  %v1703_v26 = vpack.c.bf16 %v423_v23, %v421_v22  ;;  %v425_v28 = vld [vmem:[%s2366_s21 + $0x80] sm:$0xff]  ;;  %v427_v29 = vld [vmem:[%s2366_s21 + $0x90] sm:$0xff] }
  0x73   : > { %v1705_v27 = vpack.c.bf16 %v428_v25, %v426_v24  ;;  %v430_v30 = vld [vmem:[%s2366_s21 + $0xa8] sm:$0xff]  ;;  %v432_v31 = vld [vmem:[%s2366_s21 + $0xb8] sm:$0xff]  ;;  %v1707_v32 = vpack.c.bf16 %v427_v29, %v425_v28  ;;  %v429_v34 = vld [vmem:[%s2366_s21 + $0xa0] sm:$0xff] }
  0x74   : > { %1696 = vmatpush1.bf16.msra.mxu0 %v1695_v14  ;;  %1762 = vmatpush1.bf16.msra.mxu1 %v1695_v14  ;;  %v1709_v33 = vpack.c.bf16 %v432_v31, %v430_v30  ;;  %v431_v35 = vld [vmem:[%s2366_s21 + $0xb0] sm:$0xff]  ;;  %v434_v36 = vld [vmem:[%s2366_s21 + $0xc8] sm:$0xff]  ;;  %v436_v37 = vld [vmem:[%s2366_s21 + $0xd8] sm:$0xff] }
  0x75   : > { %1698 = vmatprep.subr.bf16.mxu0 %v1697_v15  ;;  %1755 = vmatprep.subr.bf16.mxu1 %v1697_v15  ;;  %v1711_v38 = vpack.c.bf16 %v431_v35, %v429_v34  ;;  %v1713_v39 = vpack.c.bf16 %v436_v37, %v434_v36  ;;  %v433_v40 = vld [vmem:[%s2366_s21 + $0xc0] sm:$0xff]  ;;  %v435_v41 = vld [vmem:[%s2366_s21 + $0xd0] sm:$0xff]  ;;  %v438_v42 = vld [vmem:[%s2366_s21 + $0xe8] sm:$0xff] }
  0x76   : > { %v440_v43 = vld [vmem:[%s2366_s21 + $0xf8] sm:$0xff]  ;;  %v1715_v44 = vpack.c.bf16 %v435_v41, %v433_v40  ;;  %v437_v46 = vld [vmem:[%s2366_s21 + $0xe0] sm:$0xff]  ;;  %v439_v47 = vld [vmem:[%s2366_s21 + $0xf0] sm:$0xff] }
  0x77   : > { %v1717_v45 = vpack.c.bf16 %v440_v43, %v438_v42  ;;  %v1719_v48 = vpack.c.bf16 %v439_v47, %v437_v46  ;;  %v377_v49 = vld [vmem:[#allocation3] sm:$0xff]  ;;  %v378_v51 = vld [vmem:[#allocation3 + $0x8] sm:$0xff]  ;;  %v379_v53 = vld [vmem:[#allocation3 + $0x10] sm:$0xff] }
  0x78   : > { %1700 = vmatpush1.bf16.msra.mxu0 %v1699_v20  ;;  %1763 = vmatpush1.bf16.msra.mxu1 %v1699_v20  ;;  %v401_v50 = vld [vmem:[#allocation3 + $0xc0] sm:$0xff]  ;;  %v402_v52 = vld [vmem:[#allocation3 + $0xc8] sm:$0xff]  ;;  %v403_v54 = vld [vmem:[#allocation3 + $0xd0] sm:$0xff] }
  0x79   : > { %1702 = vmatprep.subr.bf16.mxu0 %v1701_v21  ;;  %1756 = vmatprep.subr.bf16.mxu1 %v1701_v21  ;;  %v380_v55 = vld [vmem:[#allocation3 + $0x18] sm:$0xff]  ;;  %v381_v57 = vld [vmem:[#allocation3 + $0x20] sm:$0xff]  ;;  %v382_v59 = vld [vmem:[#allocation3 + $0x28] sm:$0xff] }
  0x7a   : > { %v404_v56 = vld [vmem:[#allocation3 + $0xd8] sm:$0xff]  ;;  %v405_v58 = vld [vmem:[#allocation3 + $0xe0] sm:$0xff]  ;;  %v406_v60 = vld [vmem:[#allocation3 + $0xe8] sm:$0xff] }
  0x7b   : > { %v383_v61 = vld [vmem:[#allocation3 + $0x30] sm:$0xff]  ;;  %v384_v63 = vld [vmem:[#allocation3 + $0x38] sm:$0xff]  ;;  %v385_v2 = vld [vmem:[#allocation3 + $0x40] sm:$0xff] }
  0x7c   : > { %1704 = vmatpush1.bf16.msra.mxu0 %v1703_v26  ;;  %1764 = vmatpush1.bf16.msra.mxu1 %v1703_v26  ;;  %v407_v62 = vld [vmem:[#allocation3 + $0xf0] sm:$0xff]  ;;  %v408_v1 = vld [vmem:[#allocation3 + $0xf8] sm:$0xff]  ;;  %v386_v3 = vld [vmem:[#allocation3 + $0x48] sm:$0xff] }
  0x7d   : > { %1706 = vmatprep.subr.bf16.mxu0 %v1705_v27  ;;  %1757 = vmatprep.subr.bf16.mxu1 %v1705_v27  ;;  %v387_v4 = vld [vmem:[#allocation3 + $0x50] sm:$0xff]  ;;  %v388_v5 = vld [vmem:[#allocation3 + $0x58] sm:$0xff]  ;;  %v389_v6 = vld [vmem:[#allocation3 + $0x60] sm:$0xff] }
  0x7e   : > { %v390_v7 = vld [vmem:[#allocation3 + $0x68] sm:$0xff]  ;;  %v391_v8 = vld [vmem:[#allocation3 + $0x70] sm:$0xff]  ;;  %v392_v9 = vld [vmem:[#allocation3 + $0x78] sm:$0xff] }
  0x7f   : > { %v393_v10 = vld [vmem:[#allocation3 + $0x80] sm:$0xff]  ;;  %v394_v11 = vld [vmem:[#allocation3 + $0x88] sm:$0xff]  ;;  %v395_v12 = vld [vmem:[#allocation3 + $0x90] sm:$0xff] }
  0x80   : > { %1708 = vmatpush1.bf16.msra.mxu0 %v1707_v32  ;;  %1765 = vmatpush1.bf16.msra.mxu1 %v1707_v32  ;;  %v396_v13 = vld [vmem:[#allocation3 + $0x98] sm:$0xff]  ;;  %v397_v14 = vld [vmem:[#allocation3 + $0xa0] sm:$0xff]  ;;  %v398_v15 = vld [vmem:[#allocation3 + $0xa8] sm:$0xff] }
  0x81   : > { %1710 = vmatprep.subr.bf16.mxu0 %v1709_v33  ;;  %1758 = vmatprep.subr.bf16.mxu1 %v1709_v33  ;;  %v954_v16 = vld [vmem:[%s2436_s9] sm:$0xff]  ;;  %v955_v17 = vld [vmem:[%s2436_s9 + $0x8] sm:$0xff]  ;;  %v399_v19 = vld [vmem:[#allocation3 + $0xb0] sm:$0xff] }
  0x82   : > { %v1721_v18 = vpack.c.bf16 %v955_v17, %v954_v16  ;;  %v956_v20 = vld [vmem:[%s2436_s9 + $0x10] sm:$0xff]  ;;  %v957_v21 = vld [vmem:[%s2436_s9 + $0x18] sm:$0xff]  ;;  %v958_v24 = vld [vmem:[%s2436_s9 + $0x20] sm:$0xff] }
  0x83   : > { %v1725_v22 = vpack.c.bf16 %v957_v21, %v956_v20  ;;  %v400_v23 = vld [vmem:[#allocation3 + $0xb8] sm:$0xff]  ;;  %v959_v25 = vld [vmem:[%s2436_s9 + $0x28] sm:$0xff]  ;;  %v960_v27 = vld [vmem:[%s2436_s9 + $0x30] sm:$0xff] }
  0x84   : > { %1712 = vmatpush1.bf16.msra.mxu0 %v1711_v38  ;;  %1766 = vmatpush1.bf16.msra.mxu1 %v1711_v38  ;;  %v1729_v26 = vpack.c.bf16 %v959_v25, %v958_v24  ;;  %v961_v28 = vld [vmem:[%s2436_s9 + $0x38] sm:$0xff]  ;;  %v963_v30 = vld [vmem:[%s2436_s9 + $0x48] sm:$0xff]  ;;  %v964_v32 = vld [vmem:[%s2436_s9 + $0x50] sm:$0xff] }
  0x85   : > { %1714 = vmatprep.subr.bf16.mxu0 %v1713_v39  ;;  %1759 = vmatprep.subr.bf16.mxu1 %v1713_v39  ;;  %v1733_v29 = vpack.c.bf16 %v961_v28, %v960_v27  ;;  %v965_v33 = vld [vmem:[%s2436_s9 + $0x58] sm:$0xff]  ;;  %v966_v35 = vld [vmem:[%s2436_s9 + $0x60] sm:$0xff]  ;;  %v967_v36 = vld [vmem:[%s2436_s9 + $0x68] sm:$0xff] }
  0x86   : > { %v1741_v34 = vpack.c.bf16 %v965_v33, %v964_v32  ;;  %v1745_v37 = vpack.c.bf16 %v967_v36, %v966_v35  ;;  %v968_v38 = vld [vmem:[%s2436_s9 + $0x70] sm:$0xff]  ;;  %v969_v39 = vld [vmem:[%s2436_s9 + $0x78] sm:$0xff] }
  0x87   : > { %v1749_v40 = vpack.c.bf16 %v969_v39, %v968_v38 }
  0x88   : > { %1716 = vmatpush1.bf16.msra.mxu0 %v1715_v44  ;;  %1767 = vmatpush1.bf16.msra.mxu1 %v1715_v44 }
  0x89   : > { %1718 = vmatprep.subr.bf16.mxu0 %v1717_v45  ;;  %1760 = vmatprep.subr.bf16.mxu1 %v1717_v45 }
  0x8c   : > { %1720 = vmatpush1.bf16.msra.mxu0 %v1719_v48  ;;  %1768 = vmatpush1.bf16.msra.mxu1 %v1719_v48 }
  0x8d   : > { %1722 = vmatprep.subr.bf16.mxu1 %v1721_v18 }
  0x8f   : > { %506 = vmatmul.mubr.f32.vlgmr.msra.gmra.mrb[0].mxu0 %v377_v49  ;;  %650 = vmatmul.mubr.f32.vlgmr.msra.gmra.mrb[0].mxu1 %v401_v50 }
  0x90   : > { %511 = vmatprep.mubr.f32.mxu0 %v2163_v0  ;;  %655 = vmatprep.mubr.f32.mxu1 %v2163_v0 }
  0x91   : > { %1724 = vmatpush3.bf16.msra.mxu1 %v1721_v18 }
  0x92   : > { %1726 = vmatprep.subr.bf16.mxu1 %v1725_v22 }
  0x93   : > { %512 = vmatmul.mubr.f32.gmra.mrb[2].mxu0 %v378_v51  ;;  %656 = vmatmul.mubr.f32.gmra.mrb[2].mxu1 %v402_v52 }
  0x94   : > { %517 = vmatprep.mubr.f32.mxu0 %v2163_v0  ;;  %661 = vmatprep.mubr.f32.mxu1 %v2163_v0 }
  0x95   : > { %1728 = vmatpush3.bf16.msra.mxu1 %v1725_v22 }
  0x96   : > { %1730 = vmatprep.subr.bf16.mxu1 %v1729_v26 }
  0x97   : > { %518 = vmatmul.mubr.f32.gmra.mrb[4].mxu0 %v379_v53  ;;  %662 = vmatmul.mubr.f32.gmra.mrb[4].mxu1 %v403_v54 }
  0x98   : > { %523 = vmatprep.mubr.f32.mxu0 %v2163_v0  ;;  %667 = vmatprep.mubr.f32.mxu1 %v2163_v0 }
  0x99   : > { %1732 = vmatpush3.bf16.msra.mxu1 %v1729_v26 }
  0x9a   : > { %1734 = vmatprep.subr.bf16.mxu1 %v1733_v29 }
  0x9b   : > { %524 = vmatmul.mubr.f32.gmra.mrb[6].mxu0 %v380_v55  ;;  %668 = vmatmul.mubr.f32.gmra.mrb[6].mxu1 %v404_v56 }
  0x9c   : > { %529 = vmatprep.mubr.f32.mxu0 %v2163_v0  ;;  %673 = vmatprep.mubr.f32.mxu1 %v2163_v0 }
  0x9d   : > { %1736 = vmatpush3.bf16.msra.mxu1 %v1733_v29 }
  0x9f   : > { %530 = vmatmul.mubr.f32.gmra.mrb[8].mxu0 %v381_v57  ;;  %674 = vmatmul.mubr.f32.gmra.mrb[8].mxu1 %v405_v58 }
  0xa0   : > { %535 = vmatprep.mubr.f32.mxu0 %v2163_v0  ;;  %679 = vmatprep.mubr.f32.mxu1 %v2163_v0 }
  0xa3   : > { %536 = vmatmul.mubr.f32.gmra.mrb[10].mxu0 %v382_v59  ;;  %680 = vmatmul.mubr.f32.gmra.mrb[10].mxu1 %v406_v60 }
  0xa4   : > { %541 = vmatprep.mubr.f32.mxu0 %v2163_v0  ;;  %685 = vmatprep.mubr.f32.mxu1 %v2163_v0 }
  0xa7   : > { %542 = vmatmul.mubr.f32.gmra.mrb[12].mxu0 %v383_v61  ;;  %686 = vmatmul.mubr.f32.gmra.mrb[12].mxu1 %v407_v62 }
  0xa8   : > { %547 = vmatprep.mubr.f32.mxu0 %v2163_v0  ;;  %691 = vmatprep.mubr.f32.mxu1 %v2163_v0 }
  0xab   : > { %548 = vmatmul.mubr.f32.gmra.mrb[14].mxu0 %v384_v63  ;;  %692 = vmatmul.mubr.f32.gmra.mrb[14].mxu1 %v408_v1 }
  0xac   : > { %553 = vmatprep.mubr.f32.mxu0 %v2163_v0 }
  0xaf   : > { %554 = vmatmul.mubr.f32.gmra.mrb[16].mxu0 %v385_v2 }
  0xb0   : > { %559 = vmatprep.mubr.f32.mxu0 %v2163_v0 }
  0xb3   : > { %560 = vmatmul.mubr.f32.gmra.mrb[18].mxu0 %v386_v3 }
  0xb4   : > { %565 = vmatprep.mubr.f32.mxu0 %v2163_v0 }
  0xb7   : > { %566 = vmatmul.mubr.f32.gmra.mrb[20].mxu0 %v387_v4 }
  0xb8   : > { %571 = vmatprep.mubr.f32.mxu0 %v2163_v0 }
  0xbb   : > { %572 = vmatmul.mubr.f32.gmra.mrb[22].mxu0 %v388_v5 }
  0xbc   : > { %577 = vmatprep.mubr.f32.mxu0 %v2163_v0 }
  0xbf   : > { %578 = vmatmul.mubr.f32.gmra.mrb[24].mxu0 %v389_v6 }
  0xc0   : > { %583 = vmatprep.mubr.f32.mxu0 %v2163_v0 }
  0xc3   : > { %584 = vmatmul.mubr.f32.gmra.mrb[26].mxu0 %v390_v7 }
  0xc4   : > { %589 = vmatprep.mubr.f32.mxu0 %v2163_v0 }
  0xc7   : > { %590 = vmatmul.mubr.f32.gmra.mrb[28].mxu0 %v391_v8 }
  0xc8   : > { %595 = vmatprep.mubr.f32.mxu0 %v2163_v0 }
  0xcb   : > { %596 = vmatmul.mubr.f32.gmra.mrb[30].mxu0 %v392_v9 }
  0xcc   : > { %601 = vmatprep.mubr.f32.mxu0 %v2163_v0 }
  0xcf   : > { %602 = vmatmul.mubr.f32.gmra.mrb[32].mxu0 %v393_v10 }
  0xd0   : > { %607 = vmatprep.mubr.f32.mxu0 %v2163_v0 }
  0xd3   : > { %608 = vmatmul.mubr.f32.gmra.mrb[34].mxu0 %v394_v11 }
  0xd4   : > { %613 = vmatprep.mubr.f32.mxu0 %v2163_v0 }
  0xd7   : > { %614 = vmatmul.mubr.f32.gmra.mrb[36].mxu0 %v395_v12 }
  0xd8   : > { %619 = vmatprep.mubr.f32.mxu0 %v2163_v0 }
  0xdb   : > { %620 = vmatmul.mubr.f32.gmra.mrb[38].mxu0 %v396_v13 }
  0xdc   : > { %625 = vmatprep.mubr.f32.mxu0 %v2163_v0 }
  0xdf   : > { %626 = vmatmul.mubr.f32.gmra.mrb[40].mxu0 %v397_v14 }
  0xe0   : > { %631 = vmatprep.mubr.f32.mxu0 %v2163_v0 }
  0xe3   : > { %632 = vmatmul.mubr.f32.gmra.mrb[42].mxu0 %v398_v15 }
  0xe4   : > { %637 = vmatprep.mubr.f32.mxu0 %v2163_v0 }
  0xe7   : > { %638 = vmatmul.mubr.f32.gmra.mrb[44].mxu0 %v399_v19 }
  0xe8   : > { %643 = vmatprep.mubr.f32.mxu0 %v2163_v0  ;;  %v962_v0 = vld [vmem:[%s2436_s9 + $0x40] sm:$0xff] }
  0xe9   : > { %v1737_v31 = vpack.c.bf16 %v963_v30, %v962_v0 }
  0xeb   : > { %644 = vmatmul.mubr.f32.gmra.mrb[46].mxu0 %v400_v23  ;;  %1738 = vmatprep.subr.bf16.mxu1 %v1737_v31 }
  0xec   : > { %1740 = vmatpush3.bf16.msra.mxu1 %v1737_v31 }
  0xed   : > { %1742 = vmatprep.subr.bf16.mxu1 %v1741_v34 }
  0xf0   : > { %1744 = vmatpush3.bf16.msra.mxu1 %v1741_v34 }
  0xf1   : > { %1746 = vmatprep.subr.bf16.mxu1 %v1745_v37 }
  0xf4   : > { %1748 = vmatpush3.bf16.msra.mxu1 %v1745_v37 }
  0xf5   : > { %1750 = vmatprep.subr.bf16.mxu1 %v1749_v40 }
  0xf8   : > { %1752 = vmatpush3.bf16.msra.mxu1 %v1749_v40 }
 0x162   : > { %v2456_v41 = vpop.f32.mrb[0].mxu0  ;;  %v2458_v42 = vpop.f32.mrb[0].mxu1 }
 0x163   : > { %v1520_v43 = vmul.f32 -1.442695, %v2456_v41  ;;  %v2461_v44 = vpop.f32.mrb[1].mxu0  ;;  %v1544_v45 = vmul.f32 -1.442695, %v2458_v42  ;;  %v2464_v46 = vpop.f32.mrb[1].mxu1 }
 0x165   : > { %1854 = vpow2.f32 %v1520_v43 }
 0x166   : > { %v2466_v47 = vpop.f32.mrb[2].mxu0  ;;  %1856 = vpow2.f32 %v1544_v45  ;;  %v2468_v48 = vpop.f32.mrb[2].mxu1 }
 0x167   : > { %v1521_v49 = vmul.f32 -1.442695, %v2466_v47  ;;  %v2471_v50 = vpop.f32.mrb[3].mxu0  ;;  %v1545_v51 = vmul.f32 -1.442695, %v2468_v48  ;;  %v2474_v52 = vpop.f32.mrb[3].mxu1 }
 0x169   : > { %1858 = vpow2.f32 %v1521_v49 }
 0x16a   : > { %v2476_v53 = vpop.f32.mrb[4].mxu0  ;;  %1860 = vpow2.f32 %v1545_v51  ;;  %v2478_v54 = vpop.f32.mrb[4].mxu1 }
 0x16b   : > { %v1522_v55 = vmul.f32 -1.442695, %v2476_v53  ;;  %v2481_v56 = vpop.f32.mrb[5].mxu0  ;;  %v1546_v57 = vmul.f32 -1.442695, %v2478_v54  ;;  %v2484_v58 = vpop.f32.mrb[5].mxu1 }
 0x16d   : > { %1862 = vpow2.f32 %v1522_v55 }
 0x16e   : > { %v2486_v59 = vpop.f32.mrb[6].mxu0  ;;  %1864 = vpow2.f32 %v1546_v57  ;;  %v2488_v60 = vpop.f32.mrb[6].mxu1 }
 0x16f   : > { %v1855_v61 = vpop.eup %1854  ;;  %v1523_v62 = vmul.f32 -1.442695, %v2486_v59  ;;  %v2491_v63 = vpop.f32.mrb[7].mxu0  ;;  %v1547_v4 = vmul.f32 -1.442695, %v2488_v60 }
 0x170   : > { %v2493_v1 = vpop.f32.mrb[7].mxu1  ;;  %v1857_v2 = vpop.eup %1856  ;;  %v794_v3 = vadd.f32 1.0, %v1855_v61 }
 0x171   : > { %1866 = vpow2.f32 %v1523_v62  ;;  %v818_v5 = vadd.f32 1.0, %v1857_v2 }
 0x172   : > { %1868 = vrcp.f32 %v794_v3  ;;  %v2496_v6 = vpop.f32.mrb[8].mxu0  ;;  %v2498_v7 = vpop.f32.mrb[8].mxu1 }
 0x173   : > { %v1859_v8 = vpop.eup %1858  ;;  %v1524_v9 = vmul.f32 -1.442695, %v2496_v6  ;;  %v2501_v10 = vpop.f32.mrb[9].mxu0  ;;  %1870 = vrcp.f32 %v818_v5  ;;  %v1548_v14 = vmul.f32 -1.442695, %v2498_v7 }
 0x174   : > { %v2503_v11 = vpop.f32.mrb[9].mxu1  ;;  %v1861_v12 = vpop.eup %1860  ;;  %v795_v13 = vadd.f32 1.0, %v1859_v8  ;;  %1872 = vpow2.f32 %v1547_v4 }
 0x175   : > { %1874 = vpow2.f32 %v1524_v9  ;;  %v819_v15 = vadd.f32 1.0, %v1861_v12 }
 0x176   : > { %1876 = vrcp.f32 %v795_v13  ;;  %v2506_v16 = vpop.f32.mrb[10].mxu0  ;;  %v2508_v17 = vpop.f32.mrb[10].mxu1 }
 0x177   : > { %v1863_v18 = vpop.eup %1862  ;;  %v1525_v19 = vmul.f32 -1.442695, %v2506_v16  ;;  %v2511_v20 = vpop.f32.mrb[11].mxu0  ;;  %1878 = vrcp.f32 %v819_v15  ;;  %v1549_v24 = vmul.f32 -1.442695, %v2508_v17 }
 0x178   : > { %v2513_v21 = vpop.f32.mrb[11].mxu1  ;;  %v1865_v22 = vpop.eup %1864  ;;  %v796_v23 = vadd.f32 1.0, %v1863_v18  ;;  %1880 = vpow2.f32 %v1548_v14 }
 0x179   : > { %1882 = vpow2.f32 %v1525_v19  ;;  %v820_v25 = vadd.f32 1.0, %v1865_v22 }
 0x17a   : > { %1884 = vrcp.f32 %v796_v23  ;;  %v2516_v26 = vpop.f32.mrb[12].mxu0  ;;  %v2518_v27 = vpop.f32.mrb[12].mxu1 }
 0x17b   : > { %v1867_v28 = vpop.eup %1866  ;;  %v1526_v29 = vmul.f32 -1.442695, %v2516_v26  ;;  %v2521_v0 = vpop.f32.mrb[13].mxu0  ;;  %1886 = vrcp.f32 %v820_v25  ;;  %v1550_v30 = vmul.f32 -1.442695, %v2518_v27 }
 0x17c   : > { %v2524_v31 = vpop.f32.mrb[13].mxu1  ;;  %v1869_v32 = vpop.eup %1868  ;;  %v797_v33 = vadd.f32 1.0, %v1867_v28  ;;  %1888 = vpow2.f32 %v1549_v24 }
 0x17d   : > { %v1871_v34 = vpop.eup %1870  ;;  %v890_v35 = vmul.f32 %v1869_v32, %v2456_v41  ;;  %1890 = vpow2.f32 %v1526_v29 }
 0x17e   : > { %v1873_v36 = vpop.eup %1872  ;;  %1892 = vrcp.f32 %v797_v33  ;;  %v2527_v37 = vpop.f32.mrb[14].mxu0  ;;  %v914_v38 = vmul.f32 %v1871_v34, %v2458_v42 }
 0x17f   : > { %v2530_v39 = vpop.f32.mrb[14].mxu1  ;;  %v1875_v40 = vpop.eup %1874  ;;  %v922_v43 = vmul.f32 %v890_v35, %v2461_v44  ;;  %v1527_v45 = vmul.f32 -1.442695, %v2527_v37  ;;  %v821_v51 = vadd.f32 1.0, %v1873_v36  ;;  %1894 = vpow2.f32 %v1550_v30 }
 0x180   : > { %v2534_v49 = vpop.f32.mrb[15].mxu0  ;;  %v2536_v55 = vpop.f32.mrb[15].mxu1  ;;  %v798_v57 = vadd.f32 1.0, %v1875_v40  ;;  %v2539_v61 = vmul.f32 %v914_v38, %v2464_v46  ;;  %v1551_v42 = vmul.f32 -1.442695, %v2530_v39 }
 0x181   : > { %v1877_v41 = vpop.eup %1876  ;;  %1896 = vpow2.f32 %v1527_v45  ;;  %1641 = vmatprep.mubr.f32.mxu1 %v922_v43 }
 0x182   : > { %v1879_v62 = vpop.eup %1878  ;;  %v891_v2 = vmul.f32 %v1877_v41, %v2466_v47  ;;  %1898 = vrcp.f32 %v798_v57  ;;  %v2543_v3 = vpop.f32.mrb[16].mxu0 }
 0x183   : > { %v1881_v44 = vpop.eup %1880  ;;  %v915_v4 = vmul.f32 %v1879_v62, %v2468_v48  ;;  %v1528_v9 = vmul.f32 -1.442695, %v2543_v3  ;;  %v2548_v46 = vpop.f32.mrb[17].mxu0  ;;  %1900 = vrcp.f32 %v821_v51 }
 0x184   : > { %v1883_v5 = vpop.eup %1882  ;;  %v923_v8 = vmul.f32 %v891_v2, %v2471_v50  ;;  %v822_v12 = vadd.f32 1.0, %v1881_v44  ;;  %1902 = vpow2.f32 %v1551_v42 }
 0x185   : > { %v1885_v13 = vpop.eup %1884  ;;  %v799_v14 = vadd.f32 1.0, %v1883_v5  ;;  %v2551_v47 = vmul.f32 %v915_v4, %v2474_v52  ;;  %1904 = vpow2.f32 %v1528_v9 }
 0x186   : > { %v1887_v15 = vpop.eup %1886  ;;  %v892_v18 = vmul.f32 %v1885_v13, %v2476_v53  ;;  %1642 = vmatmul.mubr.f32.vlgmr.msra.gmra.mrb[16].mxu1 %v923_v8  ;;  %v2554_v50 = vpop.f32.mrb[18].mxu0 }
 0x187   : > { %v1889_v48 = vpop.eup %1888  ;;  %1906 = vrcp.f32 %v799_v14  ;;  %v916_v19 = vmul.f32 %v1887_v15, %v2478_v54  ;;  %v1529_v24 = vmul.f32 -1.442695, %v2554_v50  ;;  %v2559_v25 = vpop.f32.mrb[19].mxu0 }
 0x188   : > { %v1891_v22 = vpop.eup %1890  ;;  %v924_v23 = vmul.f32 %v892_v18, %v2481_v56  ;;  %1908 = vrcp.f32 %v822_v12  ;;  %v823_v52 = vadd.f32 1.0, %v1889_v48 }
 0x189   : > { %v1893_v28 = vpop.eup %1892  ;;  %v800_v29 = vadd.f32 1.0, %v1891_v22  ;;  %v2562_v53 = vmul.f32 %v916_v19, %v2484_v58  ;;  %1910 = vpow2.f32 %v1529_v24 }
 0x18a   : > { %v1895_v30 = vpop.eup %1894  ;;  %v893_v32 = vmul.f32 %v1893_v28, %v2486_v59  ;;  %1644 = vmatprep.mubr.f32.mxu1 %v924_v23  ;;  %v2565_v54 = vpop.f32.mrb[20].mxu0 }
 0x18b   : > { %1912 = vrcp.f32 %v800_v29  ;;  %v824_v56 = vadd.f32 1.0, %v1895_v30  ;;  %v1897_v33 = vpop.eup %1896  ;;  %v1530_v35 = vmul.f32 -1.442695, %v2565_v54  ;;  %v2569_v36 = vpop.f32.mrb[21].mxu0 }
 0x18c   : > { %v925_v34 = vmul.f32 %v893_v32, %v2491_v63  ;;  %1914 = vrcp.f32 %v823_v52  ;;  %v1899_v38 = vpop.eup %1898  ;;  %v801_v58 = vadd.f32 1.0, %v1897_v33 }
 0x18d   : > { %1916 = vrcp.f32 %v824_v56  ;;  %v1901_v40 = vpop.eup %1900  ;;  %v894_v59 = vmul.f32 %v1899_v38, %v2496_v6 }
 0x18e   : > { %1918 = vpow2.f32 %v1530_v35  ;;  %1645 = vmatmul.mubr.f32.gmra.mrb[18].mxu1 %v925_v34  ;;  %v1903_v43 = vpop.eup %1902  ;;  %v2572_v45 = vpop.f32.mrb[22].mxu0  ;;  %v917_v51 = vmul.f32 %v1901_v40, %v2488_v60 }
 0x18f   : > { %1920 = vrcp.f32 %v801_v58  ;;  %v1905_v63 = vpop.eup %1904  ;;  %v926_v41 = vmul.f32 %v894_v59, %v2501_v10  ;;  %v1531_v57 = vmul.f32 -1.442695, %v2572_v45  ;;  %v2577_v42 = vpop.f32.mrb[23].mxu0  ;;  %v825_v62 = vadd.f32 1.0, %v1903_v43 }
 0x190   : > { %v802_v44 = vadd.f32 1.0, %v1905_v63  ;;  %v2580_v6 = vmul.f32 %v917_v51, %v2493_v1 }
 0x191   : > { %v1907_v2 = vpop.eup %1906  ;;  %1922 = vpow2.f32 %v1531_v57  ;;  %1647 = vmatprep.mubr.f32.mxu1 %v926_v41 }
 0x192   : > { %v1909_v4 = vpop.eup %1908  ;;  %v895_v5 = vmul.f32 %v1907_v2, %v2506_v16  ;;  %1924 = vrcp.f32 %v802_v44  ;;  %v2583_v60 = vpop.f32.mrb[24].mxu0 }
 0x193   : > { %v918_v10 = vmul.f32 %v1909_v4, %v2498_v7  ;;  %v1911_v8 = vpop.eup %1910  ;;  %v1532_v12 = vmul.f32 -1.442695, %v2583_v60  ;;  %v2588_v13 = vpop.f32.mrb[25].mxu0  ;;  %1926 = vrcp.f32 %v825_v62 }
 0x194   : > { %v927_v9 = vmul.f32 %v895_v5, %v2511_v20  ;;  %v803_v14 = vadd.f32 1.0, %v1911_v8 }
 0x195   : > { %v1913_v1 = vpop.eup %1912  ;;  %v2591_v15 = vmul.f32 %v918_v10, %v2503_v11  ;;  %1928 = vpow2.f32 %v1532_v12 }
 0x196   : > { %v1915_v16 = vpop.eup %1914  ;;  %v896_v18 = vmul.f32 %v1913_v1, %v2516_v26  ;;  %1648 = vmatmul.mubr.f32.gmra.mrb[20].mxu1 %v927_v9  ;;  %1930 = vrcp.f32 %v803_v14  ;;  %v2594_v7 = vpop.f32.mrb[26].mxu0 }
 0x197   : > { %v1917_v48 = vpop.eup %1916  ;;  %v919_v20 = vmul.f32 %v1915_v16, %v2508_v17  ;;  %v1533_v23 = vmul.f32 -1.442695, %v2594_v7  ;;  %v2599_v24 = vpop.f32.mrb[27].mxu0 }
 0x198   : > { %v1919_v19 = vpop.eup %1918  ;;  %v928_v22 = vmul.f32 %v896_v18, %v2521_v0  ;;  %v920_v11 = vmul.f32 %v1917_v48, %v2518_v27 }
 0x199   : > { %v1921_v52 = vpop.eup %1920  ;;  %v804_v28 = vadd.f32 1.0, %v1919_v19  ;;  %v2603_v26 = vmul.f32 %v919_v20, %v2513_v21  ;;  %1932 = vpow2.f32 %v1533_v23 }
 0x19a   : > { %v897_v29 = vmul.f32 %v1921_v52, %v2527_v37  ;;  %1650 = vmatprep.mubr.f32.mxu1 %v928_v22  ;;  %v2607_v17 = vmul.f32 %v920_v11, %v2524_v31  ;;  %v2609_v0 = vpop.f32.mrb[28].mxu0 }
 0x19b   : > { %1934 = vrcp.f32 %v804_v28  ;;  %v1923_v30 = vpop.eup %1922  ;;  %v1534_v27 = vmul.f32 -1.442695, %v2609_v0  ;;  %v2613_v56 = vpop.f32.mrb[29].mxu0 }
 0x19c   : > { %v929_v32 = vmul.f32 %v897_v29, %v2534_v49  ;;  %v1925_v33 = vpop.eup %1924  ;;  %v805_v21 = vadd.f32 1.0, %v1923_v30 }
 0x19d   : > { %v1927_v34 = vpop.eup %1926  ;;  %v898_v37 = vmul.f32 %v1925_v33, %v2543_v3  ;;  %1936 = vpow2.f32 %v1534_v27 }
 0x19e   : > { %1651 = vmatmul.mubr.f32.gmra.mrb[22].mxu1 %v929_v32  ;;  %1938 = vrcp.f32 %v805_v21  ;;  %v2616_v31 = vpop.f32.mrb[30].mxu0  ;;  %v921_v35 = vmul.f32 %v1927_v34, %v2530_v39 }
 0x19f   : > { %v1929_v38 = vpop.eup %1928  ;;  %v930_v58 = vmul.f32 %v898_v37, %v2548_v46  ;;  %v1535_v49 = vmul.f32 -1.442695, %v2616_v31  ;;  %v2621_v40 = vpop.f32.mrb[31].mxu0 }
 0x1a0   : > { %v1931_v59 = vpop.eup %1930  ;;  %v806_v43 = vadd.f32 1.0, %v1929_v38  ;;  %v2624_v51 = vmul.f32 %v921_v35, %v2536_v55 }
 0x1a1   : > { %v899_v3 = vmul.f32 %v1931_v59, %v2554_v50  ;;  %1940 = vpow2.f32 %v1535_v49  ;;  %1653 = vmatprep.mubr.f32.mxu1 %v930_v58 }
 0x1a2   : > { %1942 = vrcp.f32 %v806_v43  ;;  %v2627_v63 = vpop.f32.mrb[32].mxu0 }
 0x1a3   : > { %v1933_v39 = vpop.eup %1932  ;;  %v931_v41 = vmul.f32 %v899_v3, %v2559_v25  ;;  %v1536_v46 = vmul.f32 -1.442695, %v2627_v63  ;;  %v2631_v57 = vpop.f32.mrb[33].mxu0 }
 0x1a4   : > { %v807_v2 = vadd.f32 1.0, %v1933_v39 }
 0x1a5   : > { %v1935_v62 = vpop.eup %1934  ;;  %1944 = vpow2.f32 %v1536_v46  ;;  %1654 = vmatmul.mubr.f32.gmra.mrb[24].mxu1 %v931_v41 }
 0x1a6   : > { %v900_v44 = vmul.f32 %v1935_v62, %v2565_v54  ;;  %1946 = vrcp.f32 %v807_v2  ;;  %v2634_v55 = vpop.f32.mrb[34].mxu0 }
 0x1a7   : > { %v1937_v50 = vpop.eup %1936  ;;  %v1537_v5 = vmul.f32 -1.442695, %v2634_v55  ;;  %v2638_v10 = vpop.f32.mrb[35].mxu0 }
 0x1a8   : > { %v932_v4 = vmul.f32 %v900_v44, %v2569_v36  ;;  %v1939_v25 = vpop.eup %1938  ;;  %v808_v8 = vadd.f32 1.0, %v1937_v50 }
 0x1a9   : > { %v901_v9 = vmul.f32 %v1939_v25, %v2572_v45  ;;  %1948 = vpow2.f32 %v1537_v5 }
 0x1aa   : > { %1656 = vmatprep.mubr.f32.mxu1 %v932_v4  ;;  %1950 = vrcp.f32 %v808_v8  ;;  %v2641_v54 = vpop.f32.mrb[36].mxu0 }
 0x1ab   : > { %v1941_v12 = vpop.eup %1940  ;;  %v933_v1 = vmul.f32 %v901_v9, %v2577_v42  ;;  %v1538_v14 = vmul.f32 -1.442695, %v2641_v54  ;;  %v2645_v16 = vpop.f32.mrb[37].mxu0 }
 0x1ac   : > { %v1943_v36 = vpop.eup %1942  ;;  %v809_v18 = vadd.f32 1.0, %v1941_v12 }
 0x1ad   : > { %v902_v48 = vmul.f32 %v1943_v36, %v2583_v60  ;;  %1952 = vpow2.f32 %v1538_v14  ;;  %1657 = vmatmul.mubr.f32.gmra.mrb[26].mxu1 %v933_v1 }
 0x1ae   : > { %1954 = vrcp.f32 %v809_v18  ;;  %v2648_v45 = vpop.f32.mrb[38].mxu0 }
 0x1af   : > { %v1945_v20 = vpop.eup %1944  ;;  %v934_v19 = vmul.f32 %v902_v48, %v2588_v13  ;;  %v1539_v22 = vmul.f32 -1.442695, %v2648_v45  ;;  %v2652_v23 = vpop.f32.mrb[39].mxu0 }
 0x1b0   : > { %v1947_v42 = vpop.eup %1946  ;;  %v810_v11 = vadd.f32 1.0, %v1945_v20 }
 0x1b1   : > { %v903_v52 = vmul.f32 %v1947_v42, %v2594_v7  ;;  %1956 = vpow2.f32 %v1539_v22  ;;  %1659 = vmatprep.mubr.f32.mxu1 %v934_v19 }
 0x1b2   : > { %1958 = vrcp.f32 %v810_v11  ;;  %v627_v60 = vpop.f32.mrb[40].mxu0 }
 0x1b3   : > { %v1949_v28 = vpop.eup %1948  ;;  %v935_v29 = vmul.f32 %v903_v52, %v2599_v24  ;;  %v1540_v30 = vmul.f32 -1.442695, %v627_v60  ;;  %v629_v32 = vpop.f32.mrb[41].mxu0 }
 0x1b4   : > { %v1951_v27 = vpop.eup %1950  ;;  %v811_v33 = vadd.f32 1.0, %v1949_v28 }
 0x1b5   : > { %v904_v13 = vmul.f32 %v1951_v27, %v2609_v0  ;;  %1960 = vpow2.f32 %v1540_v30  ;;  %1660 = vmatmul.mubr.f32.gmra.mrb[28].mxu1 %v935_v29 }
 0x1b6   : > { %1962 = vrcp.f32 %v811_v33  ;;  %v633_v21 = vpop.f32.mrb[42].mxu0 }
 0x1b7   : > { %v1953_v34 = vpop.eup %1952  ;;  %v936_v7 = vmul.f32 %v904_v13, %v2613_v56  ;;  %v1541_v37 = vmul.f32 -1.442695, %v633_v21  ;;  %v635_v35 = vpop.f32.mrb[43].mxu0 }
 0x1b8   : > { %v1955_v38 = vpop.eup %1954  ;;  %v812_v58 = vadd.f32 1.0, %v1953_v34 }
 0x1b9   : > { %v905_v49 = vmul.f32 %v1955_v38, %v2616_v31  ;;  %1964 = vpow2.f32 %v1541_v37  ;;  %1662 = vmatprep.mubr.f32.mxu1 %v936_v7 }
 0x1ba   : > { %1966 = vrcp.f32 %v812_v58  ;;  %v639_v24 = vpop.f32.mrb[44].mxu0 }
 0x1bb   : > { %v1957_v59 = vpop.eup %1956  ;;  %v937_v0 = vmul.f32 %v905_v49, %v2621_v40  ;;  %v1542_v43 = vmul.f32 -1.442695, %v639_v24  ;;  %v641_v3 = vpop.f32.mrb[45].mxu0 }
 0x1bc   : > { %v1959_v39 = vpop.eup %1958  ;;  %v813_v41 = vadd.f32 1.0, %v1957_v59 }
 0x1bd   : > { %v906_v46 = vmul.f32 %v1959_v39, %v2627_v63  ;;  %1968 = vpow2.f32 %v1542_v43  ;;  %1663 = vmatmul.mubr.f32.gmra.mrb[30].mxu1 %v937_v0 }
 0x1be   : > { %1970 = vrcp.f32 %v813_v41  ;;  %v645_v56 = vpop.f32.mrb[46].mxu0 }
 0x1bf   : > { %v1961_v62 = vpop.eup %1960  ;;  %v938_v31 = vmul.f32 %v906_v46, %v2631_v57  ;;  %v1543_v2 = vmul.f32 -1.442695, %v645_v56  ;;  %v647_v44 = vpop.f32.mrb[47].mxu0 }
 0x1c0   : > { %v1963_v50 = vpop.eup %1962  ;;  %v814_v4 = vadd.f32 1.0, %v1961_v62 }
 0x1c1   : > { %v907_v5 = vmul.f32 %v1963_v50, %v2634_v55  ;;  %1972 = vpow2.f32 %v1543_v2  ;;  %1665 = vmatprep.mubr.f32.mxu1 %v938_v31 }
 0x1c2   : > { %1974 = vrcp.f32 %v814_v4 }
 0x1c3   : > { %v1965_v40 = vpop.eup %1964  ;;  %v939_v25 = vmul.f32 %v907_v5, %v2638_v10 }
 0x1c4   : > { %v1967_v63 = vpop.eup %1966  ;;  %v815_v8 = vadd.f32 1.0, %v1965_v40 }
 0x1c5   : > { %v908_v9 = vmul.f32 %v1967_v63, %v2641_v54  ;;  %1666 = vmatmul.mubr.f32.gmra.mrb[32].mxu1 %v939_v25 }
 0x1c6   : > { %1976 = vrcp.f32 %v815_v8 }
 0x1c7   : > { %v1969_v12 = vpop.eup %1968  ;;  %v940_v57 = vmul.f32 %v908_v9, %v2645_v16 }
 0x1c8   : > { %v1971_v1 = vpop.eup %1970  ;;  %v816_v14 = vadd.f32 1.0, %v1969_v12 }
 0x1c9   : > { %v909_v36 = vmul.f32 %v1971_v1, %v2648_v45  ;;  %1668 = vmatprep.mubr.f32.mxu1 %v940_v57 }
 0x1ca   : > { %1978 = vrcp.f32 %v816_v14 }
 0x1cb   : > { %v1973_v55 = vpop.eup %1972  ;;  %v941_v18 = vmul.f32 %v909_v36, %v2652_v23 }
 0x1cc   : > { %v1975_v48 = vpop.eup %1974  ;;  %v817_v10 = vadd.f32 1.0, %v1973_v55 }
 0x1cd   : > { %v910_v20 = vmul.f32 %v1975_v48, %v627_v60  ;;  %1669 = vmatmul.mubr.f32.gmra.mrb[34].mxu1 %v941_v18 }
 0x1ce   : > { %1980 = vrcp.f32 %v817_v10 }
 0x1cf   : > { %v942_v54 = vmul.f32 %v910_v20, %v629_v32 }
 0x1d0   : > { %v1977_v19 = vpop.eup %1976 }
 0x1d1   : > { %v911_v22 = vmul.f32 %v1977_v19, %v633_v21  ;;  %1671 = vmatprep.mubr.f32.mxu1 %v942_v54 }
 0x1d3   : > { %v943_v42 = vmul.f32 %v911_v22, %v635_v35 }
 0x1d4   : > { %v1979_v16 = vpop.eup %1978 }
 0x1d5   : > { %v912_v11 = vmul.f32 %v1979_v16, %v639_v24  ;;  %1672 = vmatmul.mubr.f32.gmra.mrb[36].mxu1 %v943_v42 }
 0x1d7   : > { %v944_v52 = vmul.f32 %v912_v11, %v641_v3 }
 0x1d8   : > { %v1981_v45 = vpop.eup %1980 }
 0x1d9   : > { %v913_v28 = vmul.f32 %v1981_v45, %v645_v56  ;;  %1674 = vmatprep.mubr.f32.mxu1 %v944_v52 }
 0x1db   : > { %v945_v29 = vmul.f32 %v913_v28, %v647_v44 }
 0x1dd   : > { %1675 = vmatmul.mubr.f32.gmra.mrb[38].mxu1 %v945_v29 }
 0x1de   : > { %1677 = vmatprep.mubr.f32.mxu1 %v2539_v61 }
 0x1e1   : > { %1678 = vmatmul.mubr.f32.gmra.mrb[40].mxu1 %v2551_v47 }
 0x1e2   : > { %1680 = vmatprep.mubr.f32.mxu1 %v2562_v53 }
 0x1e5   : > { %1681 = vmatmul.mubr.f32.gmra.mrb[42].mxu1 %v2580_v6 }
 0x1e6   : > { %1683 = vmatprep.mubr.f32.mxu1 %v2591_v15 }
 0x1e9   : > { %1684 = vmatmul.mubr.f32.gmra.mrb[44].mxu1 %v2603_v26 }
 0x1ea   : > { %1686 = vmatprep.mubr.f32.mxu1 %v2607_v17 }
 0x1ed   : > { %1687 = vmatmul.mubr.f32.gmra.mrb[46].mxu1 %v2624_v51 }
 0x259   : > { %v2676_v23 = vpop.f32.mrb[16].mxu1 }
 0x25a   : > { %v2678_v60 = vpop.f32.mrb[17].mxu1  ;;  %1200 = vst [vmem:[#allocation2 + $0x8] sm:$0xff] (!%p1552_p3), %v2676_v23 }
 0x25b   : > { %1199 = vst [vmem:[#allocation2] sm:$0xff] (!%p1552_p3), %v2678_v60 }
 0x261   : > { %v2680_v30 = vpop.f32.mrb[18].mxu1 }
 0x262   : > { %v2682_v61 = vpop.f32.mrb[19].mxu1  ;;  %1202 = vst [vmem:[#allocation2 + $0x18] sm:$0xff] (!%p1552_p3), %v2680_v30 }
 0x263   : > { %1201 = vst [vmem:[#allocation2 + $0x10] sm:$0xff] (!%p1552_p3), %v2682_v61 }
 0x269   : > { %v2684_v47 = vpop.f32.mrb[20].mxu1 }
 0x26a   : > { %v2686_v53 = vpop.f32.mrb[21].mxu1  ;;  %1204 = vst [vmem:[#allocation2 + $0x28] sm:$0xff] (!%p1552_p3), %v2684_v47 }
 0x26b   : > { %1203 = vst [vmem:[#allocation2 + $0x20] sm:$0xff] (!%p1552_p3), %v2686_v53 }
 0x271   : > { %v2688_v6 = vpop.f32.mrb[22].mxu1 }
 0x272   : > { %v2690_v15 = vpop.f32.mrb[23].mxu1  ;;  %1206 = vst [vmem:[#allocation2 + $0x38] sm:$0xff] (!%p1552_p3), %v2688_v6 }
 0x273   : > { %1205 = vst [vmem:[#allocation2 + $0x30] sm:$0xff] (!%p1552_p3), %v2690_v15 }
 0x278   : > { %v2692_v26 = vpop.f32.mrb[24].mxu1 }
 0x279   : > { %v2694_v17 = vpop.f32.mrb[25].mxu1  ;;  %1208 = vst [vmem:[#allocation2 + $0x48] sm:$0xff] (!%p1552_p3), %v2692_v26 }
 0x27a   : > { %1207 = vst [vmem:[#allocation2 + $0x40] sm:$0xff] (!%p1552_p3), %v2694_v17 }
 0x280   : > { %v2696_v51 = vpop.f32.mrb[26].mxu1 }
 0x281   : > { %v2698_v32 = vpop.f32.mrb[27].mxu1  ;;  %1210 = vst [vmem:[#allocation2 + $0x58] sm:$0xff] (!%p1552_p3), %v2696_v51 }
 0x282   : > { %1209 = vst [vmem:[#allocation2 + $0x50] sm:$0xff] (!%p1552_p3), %v2698_v32 }
 0x288   : > { %v2700_v27 = vpop.f32.mrb[28].mxu1 }
 0x289   : > { %v2702_v33 = vpop.f32.mrb[29].mxu1  ;;  %1212 = vst [vmem:[#allocation2 + $0x68] sm:$0xff] (!%p1552_p3), %v2700_v27 }
 0x28a   : > { %1211 = vst [vmem:[#allocation2 + $0x60] sm:$0xff] (!%p1552_p3), %v2702_v33 }
 0x290   : > { %v2704_v13 = vpop.f32.mrb[30].mxu1 }
 0x291   : > { %v2706_v21 = vpop.f32.mrb[31].mxu1  ;;  %1214 = vst [vmem:[#allocation2 + $0x78] sm:$0xff] (!%p1552_p3), %v2704_v13 }
 0x292   : > { %1213 = vst [vmem:[#allocation2 + $0x70] sm:$0xff] (!%p1552_p3), %v2706_v21 }
 0x298   : > { %v2708_v34 = vpop.f32.mrb[32].mxu1 }
 0x299   : > { %v2710_v7 = vpop.f32.mrb[33].mxu1  ;;  %1216 = vst [vmem:[#allocation2 + $0x88] sm:$0xff] (!%p1552_p3), %v2708_v34 }
 0x29a   : > { %1215 = vst [vmem:[#allocation2 + $0x80] sm:$0xff] (!%p1552_p3), %v2710_v7 }
 0x2a0   : > { %v2712_v37 = vpop.f32.mrb[34].mxu1 }
 0x2a1   : > { %v2714_v35 = vpop.f32.mrb[35].mxu1  ;;  %1218 = vst [vmem:[#allocation2 + $0x98] sm:$0xff] (!%p1552_p3), %v2712_v37 }
 0x2a2   : > { %1217 = vst [vmem:[#allocation2 + $0x90] sm:$0xff] (!%p1552_p3), %v2714_v35 }
 0x2a8   : > { %v2716_v38 = vpop.f32.mrb[36].mxu1 }
 0x2a9   : > { %v2718_v58 = vpop.f32.mrb[37].mxu1  ;;  %1220 = vst [vmem:[#allocation2 + $0xa8] sm:$0xff] (!%p1552_p3), %v2716_v38 }
 0x2aa   : > { %1219 = vst [vmem:[#allocation2 + $0xa0] sm:$0xff] (!%p1552_p3), %v2718_v58 }
 0x2b0   : > { %v2720_v49 = vpop.f32.mrb[38].mxu1 }
 0x2b1   : > { %v2722_v24 = vpop.f32.mrb[39].mxu1  ;;  %1222 = vst [vmem:[#allocation2 + $0xb8] sm:$0xff] (!%p1552_p3), %v2720_v49 }
 0x2b2   : > { %1221 = vst [vmem:[#allocation2 + $0xb0] sm:$0xff] (!%p1552_p3), %v2722_v24 }
 0x2b4   : > { %v2724_v59 = vpop.f32.mrb[40].mxu1 }
 0x2b5   : > { %v2726_v0 = vpop.f32.mrb[41].mxu1  ;;  %1224 = vst [vmem:[#allocation2 + $0xc8] sm:$0xff] (!%p1552_p3), %v2724_v59 }
 0x2b6   : > { %1223 = vst [vmem:[#allocation2 + $0xc0] sm:$0xff] (!%p1552_p3), %v2726_v0 }
 0x2b8   : > { %v2728_v43 = vpop.f32.mrb[42].mxu1 }
 0x2b9   : > { %v2730_v3 = vpop.f32.mrb[43].mxu1  ;;  %1226 = vst [vmem:[#allocation2 + $0xd8] sm:$0xff] (!%p1552_p3), %v2728_v43 }
 0x2ba   : > { %1225 = vst [vmem:[#allocation2 + $0xd0] sm:$0xff] (!%p1552_p3), %v2730_v3 }
 0x2bb   : > { %1198 = sbr.rel (%p1552_p3) target bundleno = 707 (0x2c3), region = 48 }
 0x2bc   : > { %v2732_v39 = vpop.f32.mrb[44].mxu1 }
 0x2bd   : > { %v2734_v41 = vpop.f32.mrb[45].mxu1  ;;  %1228 = vst [vmem:[#allocation2 + $0xe8] sm:$0xff] (!%p1552_p3), %v2732_v39 }
 0x2be   : > { %1227 = vst [vmem:[#allocation2 + $0xe0] sm:$0xff] (!%p1552_p3), %v2734_v41 }
 0x2c0   : > { %v2736_v46 = vpop.f32.mrb[46].mxu1 }
 0x2c1   : > { %v2738_v56 = vpop.f32.mrb[47].mxu1  ;;  %1230 = vst [vmem:[#allocation2 + $0xf8] sm:$0xff] (!%p1552_p3), %v2736_v46 }
 0x2c2   : > { %1229 = vst [vmem:[#allocation2 + $0xf0] sm:$0xff] %v2738_v56 }
 0x2c3 PF: > { %p1553_p11 = scmp.le.s32.totalorder %s2146_s15, 0 }
 0x2c4   : > { %v1235_v62 = vld [vmem:[#allocation2] sm:$0xff] (!%p1553_p11)  ;;  %v1236_v31 = vld [vmem:[#allocation2 + $0x8] sm:$0xff] (!%p1553_p11)  ;;  %v1237_v2 = vld [vmem:[#allocation2 + $0x10] sm:$0xff] (!%p1553_p11) }
 0x2c5   : > { %1234 = sbr.rel (%p1553_p11) target bundleno = 727 (0x2d7), region = 52  ;;  %v1267_v44 = vadd.f32 (!%p1553_p11), %v1235_v62, %v2678_v60  ;;  %v1268_v50 = vadd.f32 (!%p1553_p11), %v2676_v23, %v1236_v31  ;;  %v1269_v4 = vadd.f32 (!%p1553_p11), %v1237_v2, %v2682_v61  ;;  %v1238_v5 = vld [vmem:[#allocation2 + $0x18] sm:$0xff] (!%p1553_p11)  ;;  %v1239_v40 = vld [vmem:[#allocation2 + $0x20] sm:$0xff] (!%p1553_p11)  ;;  %v1240_v25 = vld [vmem:[#allocation2 + $0x28] sm:$0xff] (!%p1553_p11) }
 0x2c6   : > { %v1270_v63 = vadd.f32 (!%p1553_p11), %v2680_v30, %v1238_v5  ;;  %v1271_v8 = vadd.f32 (!%p1553_p11), %v1239_v40, %v2686_v53  ;;  %v1272_v9 = vadd.f32 (!%p1553_p11), %v2684_v47, %v1240_v25  ;;  %v1241_v12 = vld [vmem:[#allocation2 + $0x30] sm:$0xff] (!%p1553_p11)  ;;  %v1242_v57 = vld [vmem:[#allocation2 + $0x38] sm:$0xff] (!%p1553_p11)  ;;  %v1243_v1 = vld [vmem:[#allocation2 + $0x40] sm:$0xff] (!%p1553_p11) }
 0x2c7   : > { %1299 = vst [vmem:[#allocation2] sm:$0xff] (!%p1553_p11), %v1267_v44  ;;  %1300 = vst [vmem:[#allocation2 + $0x8] sm:$0xff] (!%p1553_p11), %v1268_v50  ;;  %v1273_v14 = vadd.f32 (!%p1553_p11), %v1241_v12, %v2690_v15  ;;  %v1274_v36 = vadd.f32 (!%p1553_p11), %v2688_v6, %v1242_v57  ;;  %v1275_v55 = vadd.f32 (!%p1553_p11), %v1243_v1, %v2694_v17  ;;  %v1244_v18 = vld [vmem:[#allocation2 + $0x48] sm:$0xff] (!%p1553_p11)  ;;  %v1245_v48 = vld [vmem:[#allocation2 + $0x50] sm:$0xff] (!%p1553_p11) }
 0x2c8   : > { %1301 = vst [vmem:[#allocation2 + $0x10] sm:$0xff] (!%p1553_p11), %v1269_v4  ;;  %v1246_v10 = vld [vmem:[#allocation2 + $0x58] sm:$0xff] (!%p1553_p11)  ;;  %1302 = vst [vmem:[#allocation2 + $0x18] sm:$0xff] (!%p1553_p11), %v1270_v63  ;;  %v1276_v20 = vadd.f32 (!%p1553_p11), %v2692_v26, %v1244_v18  ;;  %v1277_v54 = vadd.f32 (!%p1553_p11), %v1245_v48, %v2698_v32  ;;  %v1247_v22 = vld [vmem:[#allocation2 + $0x60] sm:$0xff] (!%p1553_p11) }
 0x2c9   : > { %1303 = vst [vmem:[#allocation2 + $0x20] sm:$0xff] (!%p1553_p11), %v1271_v8  ;;  %1304 = vst [vmem:[#allocation2 + $0x28] sm:$0xff] (!%p1553_p11), %v1272_v9  ;;  %v1278_v19 = vadd.f32 (!%p1553_p11), %v2696_v51, %v1246_v10  ;;  %v1248_v42 = vld [vmem:[#allocation2 + $0x68] sm:$0xff] (!%p1553_p11)  ;;  %v1249_v16 = vld [vmem:[#allocation2 + $0x70] sm:$0xff] (!%p1553_p11)  ;;  %v1279_v11 = vadd.f32 (!%p1553_p11), %v1247_v22, %v2702_v33 }
 0x2ca   : > { %1305 = vst [vmem:[#allocation2 + $0x30] sm:$0xff] (!%p1553_p11), %v1273_v14  ;;  %1306 = vst [vmem:[#allocation2 + $0x38] sm:$0xff] (!%p1553_p11), %v1274_v36  ;;  %v1280_v52 = vadd.f32 (!%p1553_p11), %v2700_v27, %v1248_v42  ;;  %v1281_v45 = vadd.f32 (!%p1553_p11), %v1249_v16, %v2706_v21  ;;  %v1250_v28 = vld [vmem:[#allocation2 + $0x78] sm:$0xff] (!%p1553_p11)  ;;  %v1251_v29 = vld [vmem:[#allocation2 + $0x80] sm:$0xff] (!%p1553_p11) }
 0x2cb   : > { %1307 = vst [vmem:[#allocation2 + $0x40] sm:$0xff] (!%p1553_p11), %v1275_v55  ;;  %v1252_v23 = vld [vmem:[#allocation2 + $0x88] sm:$0xff] (!%p1553_p11)  ;;  %1308 = vst [vmem:[#allocation2 + $0x48] sm:$0xff] (!%p1553_p11), %v1276_v20  ;;  %v1282_v60 = vadd.f32 (!%p1553_p11), %v2704_v13, %v1250_v28  ;;  %v1283_v30 = vadd.f32 (!%p1553_p11), %v1251_v29, %v2710_v7  ;;  %v1253_v47 = vld [vmem:[#allocation2 + $0x90] sm:$0xff] (!%p1553_p11) }
 0x2cc   : > { %1309 = vst [vmem:[#allocation2 + $0x50] sm:$0xff] %v1277_v54  ;;  %1310 = vst [vmem:[#allocation2 + $0x58] sm:$0xff] %v1278_v19  ;;  %v1284_v61 = vadd.f32 %v2708_v34, %v1252_v23  ;;  %v1254_v53 = vld [vmem:[#allocation2 + $0x98] sm:$0xff]  ;;  %v1255_v6 = vld [vmem:[#allocation2 + $0xa0] sm:$0xff]  ;;  %v1285_v15 = vadd.f32 %v1253_v47, %v2714_v35 }
 0x2cd   : > { %1311 = vst [vmem:[#allocation2 + $0x60] sm:$0xff] %v1279_v11  ;;  %1312 = vst [vmem:[#allocation2 + $0x68] sm:$0xff] %v1280_v52  ;;  %v1286_v26 = vadd.f32 %v2712_v37, %v1254_v53  ;;  %v1287_v17 = vadd.f32 %v1255_v6, %v2718_v58  ;;  %v1256_v51 = vld [vmem:[#allocation2 + $0xa8] sm:$0xff]  ;;  %v1257_v32 = vld [vmem:[#allocation2 + $0xb0] sm:$0xff] }
 0x2ce   : > { %1313 = vst [vmem:[#allocation2 + $0x70] sm:$0xff] %v1281_v45  ;;  %v1258_v27 = vld [vmem:[#allocation2 + $0xb8] sm:$0xff]  ;;  %1314 = vst [vmem:[#allocation2 + $0x78] sm:$0xff] %v1282_v60  ;;  %v1288_v33 = vadd.f32 %v2716_v38, %v1256_v51  ;;  %v1289_v13 = vadd.f32 %v1257_v32, %v2722_v24  ;;  %v1259_v34 = vld [vmem:[#allocation2 + $0xc0] sm:$0xff] }
 0x2cf   : > { %1315 = vst [vmem:[#allocation2 + $0x80] sm:$0xff] %v1283_v30  ;;  %1316 = vst [vmem:[#allocation2 + $0x88] sm:$0xff] %v1284_v61  ;;  %v1290_v21 = vadd.f32 %v2720_v49, %v1258_v27  ;;  %v1260_v7 = vld [vmem:[#allocation2 + $0xc8] sm:$0xff]  ;;  %v1261_v62 = vld [vmem:[#allocation2 + $0xd0] sm:$0xff]  ;;  %v1291_v37 = vadd.f32 %v1259_v34, %v2726_v0 }
 0x2d0   : > { %1317 = vst [vmem:[#allocation2 + $0x90] sm:$0xff] %v1285_v15  ;;  %1318 = vst [vmem:[#allocation2 + $0x98] sm:$0xff] %v1286_v26  ;;  %v1292_v35 = vadd.f32 %v2724_v59, %v1260_v7  ;;  %v1293_v58 = vadd.f32 %v1261_v62, %v2730_v3  ;;  %v1262_v31 = vld [vmem:[#allocation2 + $0xd8] sm:$0xff]  ;;  %v1263_v2 = vld [vmem:[#allocation2 + $0xe0] sm:$0xff] }
 0x2d1   : > { %1319 = vst [vmem:[#allocation2 + $0xa0] sm:$0xff] %v1287_v17  ;;  %v1264_v44 = vld [vmem:[#allocation2 + $0xe8] sm:$0xff]  ;;  %1320 = vst [vmem:[#allocation2 + $0xa8] sm:$0xff] %v1288_v33  ;;  %v1294_v38 = vadd.f32 %v2728_v43, %v1262_v31  ;;  %v1295_v49 = vadd.f32 %v1263_v2, %v2734_v41  ;;  %v1265_v50 = vld [vmem:[#allocation2 + $0xf0] sm:$0xff] }
 0x2d2   : > { %1321 = vst [vmem:[#allocation2 + $0xb0] sm:$0xff] %v1289_v13  ;;  %1322 = vst [vmem:[#allocation2 + $0xb8] sm:$0xff] %v1290_v21  ;;  %v1296_v24 = vadd.f32 %v2732_v39, %v1264_v44  ;;  %v1266_v4 = vld [vmem:[#allocation2 + $0xf8] sm:$0xff]  ;;  %v1297_v59 = vadd.f32 %v1265_v50, %v2738_v56 }
 0x2d3   : > { %1323 = vst [vmem:[#allocation2 + $0xc0] sm:$0xff] %v1291_v37  ;;  %1324 = vst [vmem:[#allocation2 + $0xc8] sm:$0xff] %v1292_v35  ;;  %v1298_v0 = vadd.f32 %v2736_v46, %v1266_v4 }
 0x2d4   : > { %1325 = vst [vmem:[#allocation2 + $0xd0] sm:$0xff] %v1293_v58  ;;  %1326 = vst [vmem:[#allocation2 + $0xd8] sm:$0xff] %v1294_v38 }
 0x2d5   : > { %1327 = vst [vmem:[#allocation2 + $0xe0] sm:$0xff] %v1295_v49  ;;  %1328 = vst [vmem:[#allocation2 + $0xe8] sm:$0xff] %v1296_v24 }
 0x2d6   : > { %1329 = vst [vmem:[#allocation2 + $0xf0] sm:$0xff] %v1297_v59  ;;  %1330 = vst [vmem:[#allocation2 + $0xf8] sm:$0xff] %v1298_v0 }
 0x2d7 PF: > { %p1554_p1 = scmp.ne.s32.totalorder %s2146_s15, 2 }
 0x2d8   : > { %v1347_v12 = vld [vmem:[#allocation2 + $0x60] sm:$0xff] (!%p1554_p1)  ;;  %v1348_v57 = vld [vmem:[#allocation2 + $0x68] sm:$0xff] (!%p1554_p1)  ;;  %v1349_v1 = vld [vmem:[#allocation2 + $0x70] sm:$0xff] (!%p1554_p1) }
 0x2d9   : > { %1334 = sbr.rel (%p1554_p1) target bundleno = 745 (0x2e9), region = 56  ;;  %v1335_v43 = vld [vmem:[#allocation2] sm:$0xff] (!%p1554_p1)  ;;  %v1336_v3 = vld [vmem:[#allocation2 + $0x8] sm:$0xff] (!%p1554_p1)  ;;  %1379 = vst [vmem:[#allocation9 + $0x60] sm:$0xff] (!%p1554_p1), %v1347_v12  ;;  %1380 = vst [vmem:[#allocation9 + $0x68] sm:$0xff] (!%p1554_p1), %v1348_v57 }
 0x2da   : > { %v1337_v39 = vld [vmem:[#allocation2 + $0x10] sm:$0xff] (!%p1554_p1)  ;;  %1367 = vst [vmem:[#allocation9] sm:$0xff] (!%p1554_p1), %v1335_v43  ;;  %1368 = vst [vmem:[#allocation9 + $0x8] sm:$0xff] (!%p1554_p1), %v1336_v3  ;;  %v1338_v41 = vld [vmem:[#allocation2 + $0x18] sm:$0xff] (!%p1554_p1) }
 0x2db   : > { %1369 = vst [vmem:[#allocation9 + $0x10] sm:$0xff] (!%p1554_p1), %v1337_v39  ;;  %v1339_v5 = vld [vmem:[#allocation2 + $0x20] sm:$0xff] (!%p1554_p1)  ;;  %v1340_v56 = vld [vmem:[#allocation2 + $0x28] sm:$0xff] (!%p1554_p1)  ;;  %1370 = vst [vmem:[#allocation9 + $0x18] sm:$0xff] (!%p1554_p1), %v1338_v41 }
 0x2dc   : > { %1371 = vst [vmem:[#allocation9 + $0x20] sm:$0xff] (!%p1554_p1), %v1339_v5  ;;  %1372 = vst [vmem:[#allocation9 + $0x28] sm:$0xff] (!%p1554_p1), %v1340_v56  ;;  %v1341_v46 = vld [vmem:[#allocation2 + $0x30] sm:$0xff] (!%p1554_p1)  ;;  %v1342_v40 = vld [vmem:[#allocation2 + $0x38] sm:$0xff] (!%p1554_p1) }
 0x2dd   : > { %v1343_v25 = vld [vmem:[#allocation2 + $0x40] sm:$0xff] (!%p1554_p1)  ;;  %1373 = vst [vmem:[#allocation9 + $0x30] sm:$0xff] (!%p1554_p1), %v1341_v46  ;;  %1374 = vst [vmem:[#allocation9 + $0x38] sm:$0xff] (!%p1554_p1), %v1342_v40  ;;  %v1344_v63 = vld [vmem:[#allocation2 + $0x48] sm:$0xff] (!%p1554_p1) }
 0x2de   : > { %1375 = vst [vmem:[#allocation9 + $0x40] sm:$0xff] (!%p1554_p1), %v1343_v25  ;;  %v1345_v8 = vld [vmem:[#allocation2 + $0x50] sm:$0xff] (!%p1554_p1)  ;;  %v1346_v9 = vld [vmem:[#allocation2 + $0x58] sm:$0xff] (!%p1554_p1)  ;;  %1376 = vst [vmem:[#allocation9 + $0x48] sm:$0xff] (!%p1554_p1), %v1344_v63 }
 0x2df   : > { %1377 = vst [vmem:[#allocation9 + $0x50] sm:$0xff] (!%p1554_p1), %v1345_v8  ;;  %1378 = vst [vmem:[#allocation9 + $0x58] sm:$0xff] (!%p1554_p1), %v1346_v9  ;;  %v1350_v14 = vld [vmem:[#allocation2 + $0x78] sm:$0xff] (!%p1554_p1)  ;;  %v1351_v36 = vld [vmem:[#allocation2 + $0x80] sm:$0xff] (!%p1554_p1) }
 0x2e0   : > { %1381 = vst [vmem:[#allocation9 + $0x70] sm:$0xff] %v1349_v1  ;;  %v1352_v55 = vld [vmem:[#allocation2 + $0x88] sm:$0xff]  ;;  %1382 = vst [vmem:[#allocation9 + $0x78] sm:$0xff] %v1350_v14  ;;  %v1353_v18 = vld [vmem:[#allocation2 + $0x90] sm:$0xff] }
 0x2e1   : > { %1383 = vst [vmem:[#allocation9 + $0x80] sm:$0xff] %v1351_v36  ;;  %1384 = vst [vmem:[#allocation9 + $0x88] sm:$0xff] %v1352_v55  ;;  %v1354_v48 = vld [vmem:[#allocation2 + $0x98] sm:$0xff]  ;;  %v1355_v10 = vld [vmem:[#allocation2 + $0xa0] sm:$0xff] }
 0x2e2   : > { %1385 = vst [vmem:[#allocation9 + $0x90] sm:$0xff] %v1353_v18  ;;  %1386 = vst [vmem:[#allocation9 + $0x98] sm:$0xff] %v1354_v48  ;;  %v1356_v20 = vld [vmem:[#allocation2 + $0xa8] sm:$0xff]  ;;  %v1357_v54 = vld [vmem:[#allocation2 + $0xb0] sm:$0xff] }
 0x2e3   : > { %1387 = vst [vmem:[#allocation9 + $0xa0] sm:$0xff] %v1355_v10  ;;  %v1358_v19 = vld [vmem:[#allocation2 + $0xb8] sm:$0xff]  ;;  %1388 = vst [vmem:[#allocation9 + $0xa8] sm:$0xff] %v1356_v20  ;;  %v1359_v22 = vld [vmem:[#allocation2 + $0xc0] sm:$0xff] }
 0x2e4   : > { %1389 = vst [vmem:[#allocation9 + $0xb0] sm:$0xff] %v1357_v54  ;;  %1390 = vst [vmem:[#allocation9 + $0xb8] sm:$0xff] %v1358_v19  ;;  %v1360_v42 = vld [vmem:[#allocation2 + $0xc8] sm:$0xff]  ;;  %v1361_v16 = vld [vmem:[#allocation2 + $0xd0] sm:$0xff] }
 0x2e5   : > { %1391 = vst [vmem:[#allocation9 + $0xc0] sm:$0xff] %v1359_v22  ;;  %1392 = vst [vmem:[#allocation9 + $0xc8] sm:$0xff] %v1360_v42  ;;  %v1362_v11 = vld [vmem:[#allocation2 + $0xd8] sm:$0xff]  ;;  %v1363_v52 = vld [vmem:[#allocation2 + $0xe0] sm:$0xff] }
 0x2e6   : > { %1393 = vst [vmem:[#allocation9 + $0xd0] sm:$0xff] %v1361_v16  ;;  %v1364_v45 = vld [vmem:[#allocation2 + $0xe8] sm:$0xff]  ;;  %1394 = vst [vmem:[#allocation9 + $0xd8] sm:$0xff] %v1362_v11  ;;  %v1365_v28 = vld [vmem:[#allocation2 + $0xf0] sm:$0xff] }
 0x2e7   : > { %1395 = vst [vmem:[#allocation9 + $0xe0] sm:$0xff] %v1363_v52  ;;  %1396 = vst [vmem:[#allocation9 + $0xe8] sm:$0xff] %v1364_v45  ;;  %v1366_v29 = vld [vmem:[#allocation2 + $0xf8] sm:$0xff] }
 0x2e8   : > { %1397 = vst [vmem:[#allocation9 + $0xf0] sm:$0xff] %v1365_v28  ;;  %1398 = vst [vmem:[#allocation9 + $0xf8] sm:$0xff] %v1366_v29 }
 0x2e9 PF: > { %p1795_p6 = scmp.eq.s32.totalorder %s2276_s7, 2  ;;  %s2164_s15 = smov [#allocation9]  }
 0x2ea   : > { %s1408_s4 = sshll.u32 %s2164_s15, 4  ;;  %s1409_s4 = int_to_ptr.vmem [resolvable:$true] %s1408_s4 }
 0x2eb   : > { %s2070_s11 = scalar_lea.vmem %s1409_s4, 4096  ;;  %p2077_p12 = scmp.lt.s32.totalorder %s1409_s4, %s1409_s4 }
 0x2ec   : > { %p2071_p4 = scmp.ne.s32.totalorder %s1409_s4, %s2070_s11  ;;  %p2078_p10 = scmp.lt.s32.totalorder %s2070_s11, %s2070_s11 }
 0x2ee   : > { %p2072_p7 = pnand %p2071_p4, %p1795_p6  ;;  %p2079_p0 = por %p2078_p10, %p2077_p12 }
 0x2f0   : > { %p2073_p9 = pneg %p2072_p7 }
 0x2f2   : > { %p2080_p8 = pnand %p2079_p0, %p2073_p9 }
 0x2f4   : > { %2083 = shalt.err (!%p2080_p8)
}
 0x2f5   : > { %s2084_s23 = scalar_lea.hbm %s2851_s3, 4096 }
 0x2f6   : > { %p2085_p2 = scmp.ne.s32.totalorder %s2851_s3, %s2084_s23  ;;  %p2090_p3 = scmp.lt.u32.totalorder %s2084_s23, %s2851_s3 }
 0x2f8   : > { %p2086_p13 = pnand %p2085_p2, %p1795_p6 }
 0x2fa   : > { %p2087_p5 = pneg %p2086_p13 }
 0x2fc   : > { %p2092_p11 = pnand %p2090_p3, %p2087_p5 }
 0x2fe   : > { %2095 = shalt.err (!%p2092_p11)
}
 0x2ff   : > { %s2165_s29 = smov 128   ;;  %s2166_s6 = smov 8  }
 0x300   : > { %1778 = dma.vmem_to_hbm [thread:$0]  (%p1795_p6), %s1409_s4, 4096, %s2851_s3, [#allocation5], %s2165_s29, %s2165_s29, %s2166_s6  }
 0x301   : > { %2129 = dma.done.wait (%p1795_p6), [#allocation5], 4096  }
 0x302   : > { %2131 = vsyncadd (%p1795_p6), [#allocation5], 4294963200 }
 0x303 PF: > { %s18_s17 = sadd.s32 1, %s2154_s17   ;;  %s2863_s12 = smov %s2138_s13 }
 0x304   : > { %p15_p1 = scmp.ge.s32.totalorder %s18_s17, 5   ;;  %s2864_s13 = smov %s2142_s14 }
 0x305   : > { %s2865_s14 = smov %s2231_s24  ;;  %s2866_s15 = smov %s2150_s16 }
 0x306   : > { %s2867_s16 = smov %s2869_s18  ;;  %17 = sbr.rel (!%p15_p1) target bundleno = 6 (0x6), region = 99 }
 0x30d   :  { %1424 = vsyncpa [#allocation4], 1 }
 0x30e   :  { %1426 = vsyncpa [#allocation4 + $0x1], 1 }
 0x30f   :  { %1427 = vsyncpa [#allocation7], 1 }
 0x310   :  { %1429 = vsyncpa [#allocation7 + $0x1], 1 }
 0x311   :  { %1430 = vsyncpa [#allocation5], 1 }
 0x312   :  { %1432 = vsyncpa [#allocation5 + $0x1], 1 }

</bundles_post_ra>
